<compile_context>
chip_gen: v7x
topology: tpu7x:2x2x1
jax: 0.10.0
libtpu: 0.0.40
codegen_flags: <defaults>
</compile_context>

<pallas_src>
import functools

import jax
import jax.numpy as jnp
from jax.experimental import pallas as pl
from jax.experimental.pallas import tpu as pltpu

_HI = jax.lax.Precision.HIGHEST


def _round_up(x, m):
    return ((x + m - 1) // m) * m


def _sigmoid(x):
    # tanh-based logistic; identical formula used in kernel and reference.
    return 0.5 * (jnp.tanh(0.5 * x) + 1.0)


# --------------------------------- Pallas kernel ---------------------------------


def _rnn_encoder_kernel(x_ref, wih_ref, whh_ref, bih_ref, bhh_ref,
                        w1t_ref, w1f_ref, b1_ref, w2_ref, b2_ref,
                        o_ref, gx_ref, *, hid_dim, use_tanh):
    act = jnp.tanh if use_tanh else jax.nn.relu
    H = hid_dim

    T, _, TB, D = x_ref.shape          # time-major tile: (T, 2, TB, D)
    G = wih_ref.shape[1]               # packed gate width (3*H rounded up to 128)
    R = 2 * TB                         # rows [0:TB] = GRU(x), rows [TB:2TB] = GRU(x^T)

    # Input projection for every timestep & both orientations in ONE MXU matmul,
    # stored to VMEM scratch so it does not stay live as a value across the loop.
    x_flat = x_ref[...].reshape(T * R, D)
    gx = jnp.dot(x_flat, wih_ref[...],
                 preferred_element_type=jnp.float32) + bih_ref[...]
    gx_ref[...] = gx.reshape(T, R, G)

    whh = whh_ref[...]                 # (H, G) — hoisted out of the time loop
    bhh = bhh_ref[...]                 # (1, G)

    def step(t, h):                    # h: (R, H) exact width, no padded lanes
        gxt = gx_ref[t]                                           # (R, G)
        gh = jnp.dot(h, whh, preferred_element_type=jnp.float32) + bhh
        # One transcendental over the packed r|z lanes, one for n (n needs r first).
        rz = _sigmoid(gxt[:, :2 * H] + gh[:, :2 * H])             # (R, 2H)
        r, z = rz[:, :H], rz[:, H:]
        n = jnp.tanh(gxt[:, 2 * H:3 * H] + r * gh[:, 2 * H:3 * H])
        return (1.0 - z) * n + z * h

    h0 = jnp.zeros((R, H), jnp.float32)
    h = jax.lax.fori_loop(0, T, step, h0, unroll=True)            # serial recurrence

    h_feat = h[:TB]                    # final hidden of GRU(x)    (dc_feat_out[-1])
    h_temp = h[TB:]                    # final hidden of GRU(x^T)  (dc_temp_out[-1])

    # fc1 over concat([h_temp, h_feat]) expressed as two matmuls (no lane concat).
    f1 = (jnp.dot(h_temp, w1t_ref[...], preferred_element_type=jnp.float32)
          + jnp.dot(h_feat, w1f_ref[...], preferred_element_type=jnp.float32)
          + b1_ref[...])
    a1 = act(f1)

    # fc2 is a matvec (F1p -> 1): keep it off the MXU (VPU mul + lane reduce).
    v = jnp.sum(a1 * w2_ref[...], axis=-1, keepdims=True) + b2_ref[...]
    o_ref[...] = act(v).astype(o_ref.dtype)


# --------------------------------- host wrapper -----------------------------------


@functools.partial(jax.jit, static_argnames=("use_tanh", "block_b"))
def rnn_encoder_forward(x, params, *, use_tanh=True, block_b=128):
    """Batched RNN_Encoder forward.

    x: (B, T, D) float32 with T == D (the module feeds x and x.T through the same
       GRU, so the input must be square).  Returns (B, 1).
    """
    wih, whh, bih, bhh, w1t, w1f, b1, w2, b2 = params
    B, T, D = x.shape
    assert T == D, "RNN_Encoder feeds x and x^T through the same GRU -> square input"
    H = whh.shape[0]
    G = wih.shape[1]

    B8 = _round_up(B, 8)
    TB = min(_round_up(block_b, 8), B8)
    if B8 <= TB and TB >= 16:
        TB = _round_up(TB // 2, 8)     # >= 2 grid steps -> both v7x TensorCores busy
    B_pad = _round_up(B, TB)

    # Stack feature run (x) and temporal run (x^T), pad batch, go time-major.
    # TODO(synk): form x^T in-kernel to halve input HBM traffic (kept host-side for
    #             lowering safety; input bytes are small relative to the recurrence).
    xs = jnp.stack([x, jnp.swapaxes(x, 1, 2)], axis=0)       # (2, B, T, D)
    xs = jnp.pad(xs, ((0, 0), (0, B_pad - B), (0, 0), (0, 0)))
    xs = jnp.transpose(xs, (2, 0, 1, 3))                     # (T, 2, B_pad, D)

    def const_spec(arr):
        nd = arr.ndim
        return pl.BlockSpec(arr.shape, lambda i, _nd=nd: (0,) * _nd)

    kernel = functools.partial(_rnn_encoder_kernel, hid_dim=H, use_tanh=use_tanh)
    out = pl.pallas_call(
        kernel,
        out_shape=jax.ShapeDtypeStruct((B_pad, 1), jnp.float32),
        grid=(B_pad // TB,),
        in_specs=[
            pl.BlockSpec((T, 2, TB, D), lambda i: (0, 0, i, 0)),
            const_spec(wih), const_spec(whh), const_spec(bih), const_spec(bhh),
            const_spec(w1t), const_spec(w1f), const_spec(b1),
            const_spec(w2), const_spec(b2),
        ],
        out_specs=pl.BlockSpec((TB, 1), lambda i: (i, 0)),
        scratch_shapes=[pltpu.VMEM((T, 2 * TB, G), jnp.float32)],
        compiler_params=pltpu.CompilerParams(
            dimension_semantics=("parallel",),
            vmem_limit_bytes=48 * 1024 * 1024),
    )(xs, wih, whh, bih, bhh, w1t, w1f, b1, w2, b2)
    return out[:B]


# ------------------------------ params (torch layout) ------------------------------


def make_params(key, in_dim, hid_dim, fc1_dim=64):
    """PyTorch-layout parameters (GRU + fc1 + fc2), default-style uniform init."""
    H, D = hid_dim, in_dim
    ks = jax.random.split(key, 8)
    kg = 1.0 / jnp.sqrt(H)
    w_ih = jax.random.uniform(ks[0], (3 * H, D), jnp.float32, -kg, kg)
    w_hh = jax.random.uniform(ks[1], (3 * H, H), jnp.float32, -kg, kg)
    b_ih = jax.random.uniform(ks[2], (3 * H,), jnp.float32, -kg, kg)
    b_hh = jax.random.uniform(ks[3], (3 * H,), jnp.float32, -kg, kg)
    k1 = 1.0 / jnp.sqrt(2 * H)
    w_fc1 = jax.random.uniform(ks[4], (fc1_dim, 2 * H), jnp.float32, -k1, k1)
    b_fc1 = jax.random.uniform(ks[5], (fc1_dim,), jnp.float32, -k1, k1)
    k2 = 1.0 / jnp.sqrt(fc1_dim)
    w_fc2 = jax.random.uniform(ks[6], (1, fc1_dim), jnp.float32, -k2, k2)
    b_fc2 = jax.random.uniform(ks[7], (1,), jnp.float32, -k2, k2)
    return dict(w_ih=w_ih, w_hh=w_hh, b_ih=b_ih, b_hh=b_hh,
                w_fc1=w_fc1, b_fc1=b_fc1, w_fc2=w_fc2, b_fc2=b_fc2)


def pad_params_for_kernel(raw, hid_dim, fc1_dim=64):
    """Transpose to (in, out) layout; pack the 3 GRU gates into one 128-lane block."""
    H = hid_dim
    G = _round_up(3 * H, 128)       # packed gate width: [ r | z | n | zeros ]
    F1p = _round_up(fc1_dim, 128)

    def pack_gates(w):              # (rows, 3H) -> (rows, G): contiguous pack, zero tail
        rows = w.shape[0]
        return jnp.zeros((rows, G), jnp.float32).at[:, :3 * H].set(w)

    wih = pack_gates(raw["w_ih"].T)            # (D, G)
    whh = pack_gates(raw["w_hh"].T)            # (H, G) — no padded hidden rows
    bih = pack_gates(raw["b_ih"][None, :])     # (1, G)
    bhh = pack_gates(raw["b_hh"][None, :])     # (1, G)

    # fc1 input order is cat([h_temp, h_feat]); split its weight per source.
    w1t = jnp.zeros((H, F1p), jnp.float32).at[:, :fc1_dim].set(raw["w_fc1"][:, :H].T)
    w1f = jnp.zeros((H, F1p), jnp.float32).at[:, :fc1_dim].set(raw["w_fc1"][:, H:].T)
    b1 = jnp.zeros((1, F1p), jnp.float32).at[:, :fc1_dim].set(raw["b_fc1"][None, :])
    w2 = jnp.zeros((1, F1p), jnp.float32).at[:, :fc1_dim].set(raw["w_fc2"])
    b2 = raw["b_fc2"].reshape(1, 1)
    return (wih, whh, bih, bhh, w1t, w1f, b1, w2, b2)


# -------------------------------- pure-JAX reference -------------------------------


def _gru_last_hidden_ref(x, w_ih, w_hh, b_ih, b_hh):
    B, T, _ = x.shape
    H = w_hh.shape[1]
    h = jnp.zeros((B, H), jnp.float32)
    for t in range(T):
        gx = jnp.dot(x[:, t, :], w_ih.T, precision=_HI) + b_ih
        gh = jnp.dot(h, w_hh.T, precision=_HI) + b_hh
        r = _sigmoid(gx[:, :H] + gh[:, :H])
        z = _sigmoid(gx[:, H:2 * H] + gh[:, H:2 * H])
        n = jnp.tanh(gx[:, 2 * H:] + r * gh[:, 2 * H:])
        h = (1.0 - z) * n + z * h
    return h


def rnn_encoder_ref(x, raw, use_tanh=True):
    act = jnp.tanh if use_tanh else jax.nn.relu
    h_feat = _gru_last_hidden_ref(x, raw["w_ih"], raw["w_hh"], raw["b_ih"], raw["b_hh"])
    h_temp = _gru_last_hidden_ref(jnp.swapaxes(x, 1, 2),
                                  raw["w_ih"], raw["w_hh"], raw["b_ih"], raw["b_hh"])
    cat = jnp.concatenate([h_temp, h_feat], axis=-1)          # temp first (as in torch.cat)
    f1 = act(jnp.dot(cat, raw["w_fc1"].T, precision=_HI) + raw["b_fc1"])
    return act(jnp.dot(f1, raw["w_fc2"].T, precision=_HI) + raw["b_fc2"])


# --------------------------------------- main --------------------------------------


if __name__ == "__main__":
    key = jax.random.PRNGKey(0)
    k_param, k_x = jax.random.split(key)

    batch = 2
    in_dim = 16        # sequence length == feature dim (x and x^T go through the same GRU)
    hid_dim = 32
    fc1_dim = 64
    use_tanh = True    # args.use_tanh == 1

    raw = make_params(k_param, in_dim, hid_dim, fc1_dim)
    padded = pad_params_for_kernel(raw, hid_dim, fc1_dim)

    x = jax.random.normal(k_x, (batch, in_dim, in_dim), dtype=jnp.float32)

    out = rnn_encoder_forward(x, padded, use_tanh=use_tanh)
    out = jax.block_until_ready(out)

    ref = rnn_encoder_ref(x, raw, use_tanh=use_tanh)
    assert out.shape == (batch, 1)
    assert jnp.allclose(out, ref, atol=5e-4, rtol=5e-4), (out, ref)

    print("KERNEL_OK")
</pallas_src>

<mosaic_0001>
module attributes {stable_mosaic.version = 11 : i64} {
  func.func @_rnn_encoder_kernel(%arg0: i32, %arg1: memref<16x2x8x16xf32, #tpu.memory_space<vmem>>, %arg2: memref<16x128xf32, #tpu.memory_space<vmem>>, %arg3: memref<32x128xf32, #tpu.memory_space<vmem>>, %arg4: memref<1x128xf32, #tpu.memory_space<vmem>>, %arg5: memref<1x128xf32, #tpu.memory_space<vmem>>, %arg6: memref<32x128xf32, #tpu.memory_space<vmem>>, %arg7: memref<32x128xf32, #tpu.memory_space<vmem>>, %arg8: memref<1x128xf32, #tpu.memory_space<vmem>>, %arg9: memref<1x128xf32, #tpu.memory_space<vmem>>, %arg10: memref<1x1xf32, #tpu.memory_space<vmem>>, %arg11: memref<8x1xf32, #tpu.memory_space<vmem>>, %arg12: memref<16x16x128xf32, #tpu.memory_space<vmem>>) attributes {dimension_semantics = [#tpu.dimension_semantics<parallel>], iteration_bounds = array<i64: 1>, scalar_prefetch = 0 : i64, scratch_operands = 1 : i64, tpu.core_type = #tpu.core_type<tc>, window_params = [{transform_indices = @transform_0, window_bounds = array<i64: 16, 2, 8, 16>}, {pipeline_mode = #tpu.pipeline_mode<synchronous>, transform_indices = @transform_1, window_bounds = array<i64: 16, 128>}, {pipeline_mode = #tpu.pipeline_mode<synchronous>, transform_indices = @transform_2, window_bounds = array<i64: 32, 128>}, {pipeline_mode = #tpu.pipeline_mode<synchronous>, transform_indices = @transform_3, window_bounds = array<i64: 1, 128>}, {pipeline_mode = #tpu.pipeline_mode<synchronous>, transform_indices = @transform_4, window_bounds = array<i64: 1, 128>}, {pipeline_mode = #tpu.pipeline_mode<synchronous>, transform_indices = @transform_5, window_bounds = array<i64: 32, 128>}, {pipeline_mode = #tpu.pipeline_mode<synchronous>, transform_indices = @transform_6, window_bounds = array<i64: 32, 128>}, {pipeline_mode = #tpu.pipeline_mode<synchronous>, transform_indices = @transform_7, window_bounds = array<i64: 1, 128>}, {pipeline_mode = #tpu.pipeline_mode<synchronous>, transform_indices = @transform_8, window_bounds = array<i64: 1, 128>}, {pipeline_mode = #tpu.pipeline_mode<synchronous>, transform_indices = @transform_9, window_bounds = array<i64: 1, 1>}, {transform_indices = @transform_10, window_bounds = array<i64: 8, 1>}]} {
    %c0 = arith.constant 0 : index
    %c0_0 = arith.constant 0 : index
    %c0_1 = arith.constant 0 : index
    %c0_2 = arith.constant 0 : index
    %0 = vector.load %arg1[%c0, %c0_0, %c0_1, %c0_2] : memref<16x2x8x16xf32, #tpu.memory_space<vmem>>, vector<16x2x8x16xf32>
    %1 = vector.shape_cast %0 : vector<16x2x8x16xf32> to vector<256x16xf32>
    %c0_3 = arith.constant 0 : index
    %c0_4 = arith.constant 0 : index
    %2 = vector.load %arg2[%c0_3, %c0_4] : memref<16x128xf32, #tpu.memory_space<vmem>>, vector<16x128xf32>
    %cst = arith.constant dense<0.000000e+00> : vector<256x128xf32>
    %3 = tpu.matmul %1, %2, %cst {dimension_numbers = #tpu.dot_dimension_numbers<[1], [0], [0], [1], [0, 0, 1, 1], [], []>} : vector<256x16xf32>, vector<16x128xf32>, vector<256x128xf32> -> vector<256x128xf32>
    %c0_5 = arith.constant 0 : index
    %c0_6 = arith.constant 0 : index
    %4 = vector.load %arg4[%c0_5, %c0_6] : memref<1x128xf32, #tpu.memory_space<vmem>>, vector<1x128xf32>
    %5 = vector.broadcast %4 : vector<1x128xf32> to vector<256x128xf32>
    %6 = arith.addf %3, %5 : vector<256x128xf32>
    %7 = vector.shape_cast %6 : vector<256x128xf32> to vector<16x16x128xf32>
    %c0_7 = arith.constant 0 : index
    %c0_8 = arith.constant 0 : index
    %c0_9 = arith.constant 0 : index
    %8 = vector.load %arg12[%c0_7, %c0_8, %c0_9] : memref<16x16x128xf32, #tpu.memory_space<vmem>>, vector<16x16x128xf32>
    tpu.vector_store %arg12[%c0_7, %c0_8, %c0_9], %7 {strides = array<i32>} : memref<16x16x128xf32, #tpu.memory_space<vmem>>, vector<16x16x128xf32>,
    %c0_10 = arith.constant 0 : index
    %c0_11 = arith.constant 0 : index
    %9 = vector.load %arg3[%c0_10, %c0_11] : memref<32x128xf32, #tpu.memory_space<vmem>>, vector<32x128xf32>
    %c0_12 = arith.constant 0 : index
    %c0_13 = arith.constant 0 : index
    %10 = vector.load %arg5[%c0_12, %c0_13] : memref<1x128xf32, #tpu.memory_space<vmem>>, vector<1x128xf32>
    %cst_14 = arith.constant 0.000000e+00 : f32
    %11 = vector.broadcast %cst_14 : f32 to vector<16x32xf32>
    %c0_i32 = arith.constant 0 : i32
    %12 = arith.index_cast %c0_i32 : i32 to index
    %c0_15 = arith.constant 0 : index
    %c0_16 = arith.constant 0 : index
    %13 = vector.load %arg12[%12, %c0_15, %c0_16] : memref<16x16x128xf32, #tpu.memory_space<vmem>>, vector<1x16x128xf32>
    %14 = vector.shape_cast %13 : vector<1x16x128xf32> to vector<16x128xf32>
    %cst_17 = arith.constant dense<0.000000e+00> : vector<16x128xf32>
    %15 = tpu.matmul %11, %9, %cst_17 {dimension_numbers = #tpu.dot_dimension_numbers<[1], [0], [0], [1], [0, 0, 1, 1], [], []>} : vector<16x32xf32>, vector<32x128xf32>, vector<16x128xf32> -> vector<16x128xf32>
    %16 = vector.broadcast %10 : vector<1x128xf32> to vector<16x128xf32>
    %17 = arith.addf %15, %16 : vector<16x128xf32>
    %18 = vector.extract_strided_slice %14 {offsets = [0, 0], sizes = [16, 64], strides = [1, 1]} : vector<16x128xf32> to vector<16x64xf32>
    %19 = vector.extract_strided_slice %17 {offsets = [0, 0], sizes = [16, 64], strides = [1, 1]} : vector<16x128xf32> to vector<16x64xf32>
    %20 = arith.addf %18, %19 : vector<16x64xf32>
    %cst_18 = arith.constant 5.000000e-01 : f32
    %21 = vector.broadcast %cst_18 : f32 to vector<16x64xf32>
    %22 = arith.mulf %21, %20 : vector<16x64xf32>
    %23 = math.tanh %22 : vector<16x64xf32>
    %cst_19 = arith.constant 1.000000e+00 : f32
    %24 = vector.broadcast %cst_19 : f32 to vector<16x64xf32>
    %25 = arith.addf %23, %24 : vector<16x64xf32>
    %cst_20 = arith.constant 5.000000e-01 : f32
    %26 = vector.broadcast %cst_20 : f32 to vector<16x64xf32>
    %27 = arith.mulf %26, %25 : vector<16x64xf32>
    %28 = vector.extract_strided_slice %27 {offsets = [0, 0], sizes = [16, 32], strides = [1, 1]} : vector<16x64xf32> to vector<16x32xf32>
    %29 = vector.extract_strided_slice %27 {offsets = [0, 32], sizes = [16, 32], strides = [1, 1]} : vector<16x64xf32> to vector<16x32xf32>
    %30 = vector.extract_strided_slice %14 {offsets = [0, 64], sizes = [16, 32], strides = [1, 1]} : vector<16x128xf32> to vector<16x32xf32>
    %31 = vector.extract_strided_slice %17 {offsets = [0, 64], sizes = [16, 32], strides = [1, 1]} : vector<16x128xf32> to vector<16x32xf32>
    %32 = arith.mulf %28, %31 : vector<16x32xf32>
    %33 = arith.addf %30, %32 : vector<16x32xf32>
    %34 = math.tanh %33 : vector<16x32xf32>
    %cst_21 = arith.constant 1.000000e+00 : f32
    %35 = vector.broadcast %cst_21 : f32 to vector<16x32xf32>
    %36 = arith.subf %35, %29 : vector<16x32xf32>
    %37 = arith.mulf %36, %34 : vector<16x32xf32>
    %38 = arith.mulf %29, %11 : vector<16x32xf32>
    %39 = arith.addf %37, %38 : vector<16x32xf32>
    %c1_i32 = arith.constant 1 : i32
    %40 = arith.index_cast %c1_i32 : i32 to index
    %c0_22 = arith.constant 0 : index
    %c0_23 = arith.constant 0 : index
    %41 = vector.load %arg12[%40, %c0_22, %c0_23] : memref<16x16x128xf32, #tpu.memory_space<vmem>>, vector<1x16x128xf32>
    %42 = vector.shape_cast %41 : vector<1x16x128xf32> to vector<16x128xf32>
    %cst_24 = arith.constant dense<0.000000e+00> : vector<16x128xf32>
    %43 = tpu.matmul %39, %9, %cst_24 {dimension_numbers = #tpu.dot_dimension_numbers<[1], [0], [0], [1], [0, 0, 1, 1], [], []>} : vector<16x32xf32>, vector<32x128xf32>, vector<16x128xf32> -> vector<16x128xf32>
    %44 = vector.broadcast %10 : vector<1x128xf32> to vector<16x128xf32>
    %45 = arith.addf %43, %44 : vector<16x128xf32>
    %46 = vector.extract_strided_slice %42 {offsets = [0, 0], sizes = [16, 64], strides = [1, 1]} : vector<16x128xf32> to vector<16x64xf32>
    %47 = vector.extract_strided_slice %45 {offsets = [0, 0], sizes = [16, 64], strides = [1, 1]} : vector<16x128xf32> to vector<16x64xf32>
    %48 = arith.addf %46, %47 : vector<16x64xf32>
    %cst_25 = arith.constant 5.000000e-01 : f32
    %49 = vector.broadcast %cst_25 : f32 to vector<16x64xf32>
    %50 = arith.mulf %49, %48 : vector<16x64xf32>
    %51 = math.tanh %50 : vector<16x64xf32>
    %cst_26 = arith.constant 1.000000e+00 : f32
    %52 = vector.broadcast %cst_26 : f32 to vector<16x64xf32>
    %53 = arith.addf %51, %52 : vector<16x64xf32>
    %cst_27 = arith.constant 5.000000e-01 : f32
    %54 = vector.broadcast %cst_27 : f32 to vector<16x64xf32>
    %55 = arith.mulf %54, %53 : vector<16x64xf32>
    %56 = vector.extract_strided_slice %55 {offsets = [0, 0], sizes = [16, 32], strides = [1, 1]} : vector<16x64xf32> to vector<16x32xf32>
    %57 = vector.extract_strided_slice %55 {offsets = [0, 32], sizes = [16, 32], strides = [1, 1]} : vector<16x64xf32> to vector<16x32xf32>
    %58 = vector.extract_strided_slice %42 {offsets = [0, 64], sizes = [16, 32], strides = [1, 1]} : vector<16x128xf32> to vector<16x32xf32>
    %59 = vector.extract_strided_slice %45 {offsets = [0, 64], sizes = [16, 32], strides = [1, 1]} : vector<16x128xf32> to vector<16x32xf32>
    %60 = arith.mulf %56, %59 : vector<16x32xf32>
    %61 = arith.addf %58, %60 : vector<16x32xf32>
    %62 = math.tanh %61 : vector<16x32xf32>
    %cst_28 = arith.constant 1.000000e+00 : f32
    %63 = vector.broadcast %cst_28 : f32 to vector<16x32xf32>
    %64 = arith.subf %63, %57 : vector<16x32xf32>
    %65 = arith.mulf %64, %62 : vector<16x32xf32>
    %66 = arith.mulf %57, %39 : vector<16x32xf32>
    %67 = arith.addf %65, %66 : vector<16x32xf32>
    %c2_i32 = arith.constant 2 : i32
    %68 = arith.index_cast %c2_i32 : i32 to index
    %c0_29 = arith.constant 0 : index
    %c0_30 = arith.constant 0 : index
    %69 = vector.load %arg12[%68, %c0_29, %c0_30] : memref<16x16x128xf32, #tpu.memory_space<vmem>>, vector<1x16x128xf32>
    %70 = vector.shape_cast %69 : vector<1x16x128xf32> to vector<16x128xf32>
    %cst_31 = arith.constant dense<0.000000e+00> : vector<16x128xf32>
    %71 = tpu.matmul %67, %9, %cst_31 {dimension_numbers = #tpu.dot_dimension_numbers<[1], [0], [0], [1], [0, 0, 1, 1], [], []>} : vector<16x32xf32>, vector<32x128xf32>, vector<16x128xf32> -> vector<16x128xf32>
    %72 = vector.broadcast %10 : vector<1x128xf32> to vector<16x128xf32>
    %73 = arith.addf %71, %72 : vector<16x128xf32>
    %74 = vector.extract_strided_slice %70 {offsets = [0, 0], sizes = [16, 64], strides = [1, 1]} : vector<16x128xf32> to vector<16x64xf32>
    %75 = vector.extract_strided_slice %73 {offsets = [0, 0], sizes = [16, 64], strides = [1, 1]} : vector<16x128xf32> to vector<16x64xf32>
    %76 = arith.addf %74, %75 : vector<16x64xf32>
    %cst_32 = arith.constant 5.000000e-01 : f32
    %77 = vector.broadcast %cst_32 : f32 to vector<16x64xf32>
    %78 = arith.mulf %77, %76 : vector<16x64xf32>
    %79 = math.tanh %78 : vector<16x64xf32>
    %cst_33 = arith.constant 1.000000e+00 : f32
    %80 = vector.broadcast %cst_33 : f32 to vector<16x64xf32>
    %81 = arith.addf %79, %80 : vector<16x64xf32>
    %cst_34 = arith.constant 5.000000e-01 : f32
    %82 = vector.broadcast %cst_34 : f32 to vector<16x64xf32>
    %83 = arith.mulf %82, %81 : vector<16x64xf32>
    %84 = vector.extract_strided_slice %83 {offsets = [0, 0], sizes = [16, 32], strides = [1, 1]} : vector<16x64xf32> to vector<16x32xf32>
    %85 = vector.extract_strided_slice %83 {offsets = [0, 32], sizes = [16, 32], strides = [1, 1]} : vector<16x64xf32> to vector<16x32xf32>
    %86 = vector.extract_strided_slice %70 {offsets = [0, 64], sizes = [16, 32], strides = [1, 1]} : vector<16x128xf32> to vector<16x32xf32>
    %87 = vector.extract_strided_slice %73 {offsets = [0, 64], sizes = [16, 32], strides = [1, 1]} : vector<16x128xf32> to vector<16x32xf32>
    %88 = arith.mulf %84, %87 : vector<16x32xf32>
    %89 = arith.addf %86, %88 : vector<16x32xf32>
    %90 = math.tanh %89 : vector<16x32xf32>
    %cst_35 = arith.constant 1.000000e+00 : f32
    %91 = vector.broadcast %cst_35 : f32 to vector<16x32xf32>
    %92 = arith.subf %91, %85 : vector<16x32xf32>
    %93 = arith.mulf %92, %90 : vector<16x32xf32>
    %94 = arith.mulf %85, %67 : vector<16x32xf32>
    %95 = arith.addf %93, %94 : vector<16x32xf32>
    %c3_i32 = arith.constant 3 : i32
    %96 = arith.index_cast %c3_i32 : i32 to index
    %c0_36 = arith.constant 0 : index
    %c0_37 = arith.constant 0 : index
    %97 = vector.load %arg12[%96, %c0_36, %c0_37] : memref<16x16x128xf32, #tpu.memory_space<vmem>>, vector<1x16x128xf32>
    %98 = vector.shape_cast %97 : vector<1x16x128xf32> to vector<16x128xf32>
    %cst_38 = arith.constant dense<0.000000e+00> : vector<16x128xf32>
    %99 = tpu.matmul %95, %9, %cst_38 {dimension_numbers = #tpu.dot_dimension_numbers<[1], [0], [0], [1], [0, 0, 1, 1], [], []>} : vector<16x32xf32>, vector<32x128xf32>, vector<16x128xf32> -> vector<16x128xf32>
    %100 = vector.broadcast %10 : vector<1x128xf32> to vector<16x128xf32>
    %101 = arith.addf %99, %100 : vector<16x128xf32>
    %102 = vector.extract_strided_slice %98 {offsets = [0, 0], sizes = [16, 64], strides = [1, 1]} : vector<16x128xf32> to vector<16x64xf32>
    %103 = vector.extract_strided_slice %101 {offsets = [0, 0], sizes = [16, 64], strides = [1, 1]} : vector<16x128xf32> to vector<16x64xf32>
    %104 = arith.addf %102, %103 : vector<16x64xf32>
    %cst_39 = arith.constant 5.000000e-01 : f32
    %105 = vector.broadcast %cst_39 : f32 to vector<16x64xf32>
    %106 = arith.mulf %105, %104 : vector<16x64xf32>
    %107 = math.tanh %106 : vector<16x64xf32>
    %cst_40 = arith.constant 1.000000e+00 : f32
    %108 = vector.broadcast %cst_40 : f32 to vector<16x64xf32>
    %109 = arith.addf %107, %108 : vector<16x64xf32>
    %cst_41 = arith.constant 5.000000e-01 : f32
    %110 = vector.broadcast %cst_41 : f32 to vector<16x64xf32>
    %111 = arith.mulf %110, %109 : vector<16x64xf32>
    %112 = vector.extract_strided_slice %111 {offsets = [0, 0], sizes = [16, 32], strides = [1, 1]} : vector<16x64xf32> to vector<16x32xf32>
    %113 = vector.extract_strided_slice %111 {offsets = [0, 32], sizes = [16, 32], strides = [1, 1]} : vector<16x64xf32> to vector<16x32xf32>
    %114 = vector.extract_strided_slice %98 {offsets = [0, 64], sizes = [16, 32], strides = [1, 1]} : vector<16x128xf32> to vector<16x32xf32>
    %115 = vector.extract_strided_slice %101 {offsets = [0, 64], sizes = [16, 32], strides = [1, 1]} : vector<16x128xf32> to vector<16x32xf32>
    %116 = arith.mulf %112, %115 : vector<16x32xf32>
    %117 = arith.addf %114, %116 : vector<16x32xf32>
    %118 = math.tanh %117 : vector<16x32xf32>
    %cst_42 = arith.constant 1.000000e+00 : f32
    %119 = vector.broadcast %cst_42 : f32 to vector<16x32xf32>
    %120 = arith.subf %119, %113 : vector<16x32xf32>
    %121 = arith.mulf %120, %118 : vector<16x32xf32>
    %122 = arith.mulf %113, %95 : vector<16x32xf32>
    %123 = arith.addf %121, %122 : vector<16x32xf32>
    %c4_i32 = arith.constant 4 : i32
    %124 = arith.index_cast %c4_i32 : i32 to index
    %c0_43 = arith.constant 0 : index
    %c0_44 = arith.constant 0 : index
    %125 = vector.load %arg12[%124, %c0_43, %c0_44] : memref<16x16x128xf32, #tpu.memory_space<vmem>>, vector<1x16x128xf32>
    %126 = vector.shape_cast %125 : vector<1x16x128xf32> to vector<16x128xf32>
    %cst_45 = arith.constant dense<0.000000e+00> : vector<16x128xf32>
    %127 = tpu.matmul %123, %9, %cst_45 {dimension_numbers = #tpu.dot_dimension_numbers<[1], [0], [0], [1], [0, 0, 1, 1], [], []>} : vector<16x32xf32>, vector<32x128xf32>, vector<16x128xf32> -> vector<16x128xf32>
    %128 = vector.broadcast %10 : vector<1x128xf32> to vector<16x128xf32>
    %129 = arith.addf %127, %128 : vector<16x128xf32>
    %130 = vector.extract_strided_slice %126 {offsets = [0, 0], sizes = [16, 64], strides = [1, 1]} : vector<16x128xf32> to vector<16x64xf32>
    %131 = vector.extract_strided_slice %129 {offsets = [0, 0], sizes = [16, 64], strides = [1, 1]} : vector<16x128xf32> to vector<16x64xf32>
    %132 = arith.addf %130, %131 : vector<16x64xf32>
    %cst_46 = arith.constant 5.000000e-01 : f32
    %133 = vector.broadcast %cst_46 : f32 to vector<16x64xf32>
    %134 = arith.mulf %133, %132 : vector<16x64xf32>
    %135 = math.tanh %134 : vector<16x64xf32>
    %cst_47 = arith.constant 1.000000e+00 : f32
    %136 = vector.broadcast %cst_47 : f32 to vector<16x64xf32>
    %137 = arith.addf %135, %136 : vector<16x64xf32>
    %cst_48 = arith.constant 5.000000e-01 : f32
    %138 = vector.broadcast %cst_48 : f32 to vector<16x64xf32>
    %139 = arith.mulf %138, %137 : vector<16x64xf32>
    %140 = vector.extract_strided_slice %139 {offsets = [0, 0], sizes = [16, 32], strides = [1, 1]} : vector<16x64xf32> to vector<16x32xf32>
    %141 = vector.extract_strided_slice %139 {offsets = [0, 32], sizes = [16, 32], strides = [1, 1]} : vector<16x64xf32> to vector<16x32xf32>
    %142 = vector.extract_strided_slice %126 {offsets = [0, 64], sizes = [16, 32], strides = [1, 1]} : vector<16x128xf32> to vector<16x32xf32>
    %143 = vector.extract_strided_slice %129 {offsets = [0, 64], sizes = [16, 32], strides = [1, 1]} : vector<16x128xf32> to vector<16x32xf32>
    %144 = arith.mulf %140, %143 : vector<16x32xf32>
    %145 = arith.addf %142, %144 : vector<16x32xf32>
    %146 = math.tanh %145 : vector<16x32xf32>
    %cst_49 = arith.constant 1.000000e+00 : f32
    %147 = vector.broadcast %cst_49 : f32 to vector<16x32xf32>
    %148 = arith.subf %147, %141 : vector<16x32xf32>
    %149 = arith.mulf %148, %146 : vector<16x32xf32>
    %150 = arith.mulf %141, %123 : vector<16x32xf32>
    %151 = arith.addf %149, %150 : vector<16x32xf32>
    %c5_i32 = arith.constant 5 : i32
    %152 = arith.index_cast %c5_i32 : i32 to index
    %c0_50 = arith.constant 0 : index
    %c0_51 = arith.constant 0 : index
    %153 = vector.load %arg12[%152, %c0_50, %c0_51] : memref<16x16x128xf32, #tpu.memory_space<vmem>>, vector<1x16x128xf32>
    %154 = vector.shape_cast %153 : vector<1x16x128xf32> to vector<16x128xf32>
    %cst_52 = arith.constant dense<0.000000e+00> : vector<16x128xf32>
    %155 = tpu.matmul %151, %9, %cst_52 {dimension_numbers = #tpu.dot_dimension_numbers<[1], [0], [0], [1], [0, 0, 1, 1], [], []>} : vector<16x32xf32>, vector<32x128xf32>, vector<16x128xf32> -> vector<16x128xf32>
    %156 = vector.broadcast %10 : vector<1x128xf32> to vector<16x128xf32>
    %157 = arith.addf %155, %156 : vector<16x128xf32>
    %158 = vector.extract_strided_slice %154 {offsets = [0, 0], sizes = [16, 64], strides = [1, 1]} : vector<16x128xf32> to vector<16x64xf32>
    %159 = vector.extract_strided_slice %157 {offsets = [0, 0], sizes = [16, 64], strides = [1, 1]} : vector<16x128xf32> to vector<16x64xf32>
    %160 = arith.addf %158, %159 : vector<16x64xf32>
    %cst_53 = arith.constant 5.000000e-01 : f32
    %161 = vector.broadcast %cst_53 : f32 to vector<16x64xf32>
    %162 = arith.mulf %161, %160 : vector<16x64xf32>
    %163 = math.tanh %162 : vector<16x64xf32>
    %cst_54 = arith.constant 1.000000e+00 : f32
    %164 = vector.broadcast %cst_54 : f32 to vector<16x64xf32>
    %165 = arith.addf %163, %164 : vector<16x64xf32>
    %cst_55 = arith.constant 5.000000e-01 : f32
    %166 = vector.broadcast %cst_55 : f32 to vector<16x64xf32>
    %167 = arith.mulf %166, %165 : vector<16x64xf32>
    %168 = vector.extract_strided_slice %167 {offsets = [0, 0], sizes = [16, 32], strides = [1, 1]} : vector<16x64xf32> to vector<16x32xf32>
    %169 = vector.extract_strided_slice %167 {offsets = [0, 32], sizes = [16, 32], strides = [1, 1]} : vector<16x64xf32> to vector<16x32xf32>
    %170 = vector.extract_strided_slice %154 {offsets = [0, 64], sizes = [16, 32], strides = [1, 1]} : vector<16x128xf32> to vector<16x32xf32>
    %171 = vector.extract_strided_slice %157 {offsets = [0, 64], sizes = [16, 32], strides = [1, 1]} : vector<16x128xf32> to vector<16x32xf32>
    %172 = arith.mulf %168, %171 : vector<16x32xf32>
    %173 = arith.addf %170, %172 : vector<16x32xf32>
    %174 = math.tanh %173 : vector<16x32xf32>
    %cst_56 = arith.constant 1.000000e+00 : f32
    %175 = vector.broadcast %cst_56 : f32 to vector<16x32xf32>
    %176 = arith.subf %175, %169 : vector<16x32xf32>
    %177 = arith.mulf %176, %174 : vector<16x32xf32>
    %178 = arith.mulf %169, %151 : vector<16x32xf32>
    %179 = arith.addf %177, %178 : vector<16x32xf32>
    %c6_i32 = arith.constant 6 : i32
    %180 = arith.index_cast %c6_i32 : i32 to index
    %c0_57 = arith.constant 0 : index
    %c0_58 = arith.constant 0 : index
    %181 = vector.load %arg12[%180, %c0_57, %c0_58] : memref<16x16x128xf32, #tpu.memory_space<vmem>>, vector<1x16x128xf32>
    %182 = vector.shape_cast %181 : vector<1x16x128xf32> to vector<16x128xf32>
    %cst_59 = arith.constant dense<0.000000e+00> : vector<16x128xf32>
    %183 = tpu.matmul %179, %9, %cst_59 {dimension_numbers = #tpu.dot_dimension_numbers<[1], [0], [0], [1], [0, 0, 1, 1], [], []>} : vector<16x32xf32>, vector<32x128xf32>, vector<16x128xf32> -> vector<16x128xf32>
    %184 = vector.broadcast %10 : vector<1x128xf32> to vector<16x128xf32>
    %185 = arith.addf %183, %184 : vector<16x128xf32>
    %186 = vector.extract_strided_slice %182 {offsets = [0, 0], sizes = [16, 64], strides = [1, 1]} : vector<16x128xf32> to vector<16x64xf32>
    %187 = vector.extract_strided_slice %185 {offsets = [0, 0], sizes = [16, 64], strides = [1, 1]} : vector<16x128xf32> to vector<16x64xf32>
    %188 = arith.addf %186, %187 : vector<16x64xf32>
    %cst_60 = arith.constant 5.000000e-01 : f32
    %189 = vector.broadcast %cst_60 : f32 to vector<16x64xf32>
    %190 = arith.mulf %189, %188 : vector<16x64xf32>
    %191 = math.tanh %190 : vector<16x64xf32>
    %cst_61 = arith.constant 1.000000e+00 : f32
    %192 = vector.broadcast %cst_61 : f32 to vector<16x64xf32>
    %193 = arith.addf %191, %192 : vector<16x64xf32>
    %cst_62 = arith.constant 5.000000e-01 : f32
    %194 = vector.broadcast %cst_62 : f32 to vector<16x64xf32>
    %195 = arith.mulf %194, %193 : vector<16x64xf32>
    %196 = vector.extract_strided_slice %195 {offsets = [0, 0], sizes = [16, 32], strides = [1, 1]} : vector<16x64xf32> to vector<16x32xf32>
    %197 = vector.extract_strided_slice %195 {offsets = [0, 32], sizes = [16, 32], strides = [1, 1]} : vector<16x64xf32> to vector<16x32xf32>
    %198 = vector.extract_strided_slice %182 {offsets = [0, 64], sizes = [16, 32], strides = [1, 1]} : vector<16x128xf32> to vector<16x32xf32>
    %199 = vector.extract_strided_slice %185 {offsets = [0, 64], sizes = [16, 32], strides = [1, 1]} : vector<16x128xf32> to vector<16x32xf32>
    %200 = arith.mulf %196, %199 : vector<16x32xf32>
    %201 = arith.addf %198, %200 : vector<16x32xf32>
    %202 = math.tanh %201 : vector<16x32xf32>
    %cst_63 = arith.constant 1.000000e+00 : f32
    %203 = vector.broadcast %cst_63 : f32 to vector<16x32xf32>
    %204 = arith.subf %203, %197 : vector<16x32xf32>
    %205 = arith.mulf %204, %202 : vector<16x32xf32>
    %206 = arith.mulf %197, %179 : vector<16x32xf32>
    %207 = arith.addf %205, %206 : vector<16x32xf32>
    %c7_i32 = arith.constant 7 : i32
    %208 = arith.index_cast %c7_i32 : i32 to index
    %c0_64 = arith.constant 0 : index
    %c0_65 = arith.constant 0 : index
    %209 = vector.load %arg12[%208, %c0_64, %c0_65] : memref<16x16x128xf32, #tpu.memory_space<vmem>>, vector<1x16x128xf32>
    %210 = vector.shape_cast %209 : vector<1x16x128xf32> to vector<16x128xf32>
    %cst_66 = arith.constant dense<0.000000e+00> : vector<16x128xf32>
    %211 = tpu.matmul %207, %9, %cst_66 {dimension_numbers = #tpu.dot_dimension_numbers<[1], [0], [0], [1], [0, 0, 1, 1], [], []>} : vector<16x32xf32>, vector<32x128xf32>, vector<16x128xf32> -> vector<16x128xf32>
    %212 = vector.broadcast %10 : vector<1x128xf32> to vector<16x128xf32>
    %213 = arith.addf %211, %212 : vector<16x128xf32>
    %214 = vector.extract_strided_slice %210 {offsets = [0, 0], sizes = [16, 64], strides = [1, 1]} : vector<16x128xf32> to vector<16x64xf32>
    %215 = vector.extract_strided_slice %213 {offsets = [0, 0], sizes = [16, 64], strides = [1, 1]} : vector<16x128xf32> to vector<16x64xf32>
    %216 = arith.addf %214, %215 : vector<16x64xf32>
    %cst_67 = arith.constant 5.000000e-01 : f32
    %217 = vector.broadcast %cst_67 : f32 to vector<16x64xf32>
    %218 = arith.mulf %217, %216 : vector<16x64xf32>
    %219 = math.tanh %218 : vector<16x64xf32>
    %cst_68 = arith.constant 1.000000e+00 : f32
    %220 = vector.broadcast %cst_68 : f32 to vector<16x64xf32>
    %221 = arith.addf %219, %220 : vector<16x64xf32>
    %cst_69 = arith.constant 5.000000e-01 : f32
    %222 = vector.broadcast %cst_69 : f32 to vector<16x64xf32>
    %223 = arith.mulf %222, %221 : vector<16x64xf32>
    %224 = vector.extract_strided_slice %223 {offsets = [0, 0], sizes = [16, 32], strides = [1, 1]} : vector<16x64xf32> to vector<16x32xf32>
    %225 = vector.extract_strided_slice %223 {offsets = [0, 32], sizes = [16, 32], strides = [1, 1]} : vector<16x64xf32> to vector<16x32xf32>
    %226 = vector.extract_strided_slice %210 {offsets = [0, 64], sizes = [16, 32], strides = [1, 1]} : vector<16x128xf32> to vector<16x32xf32>
    %227 = vector.extract_strided_slice %213 {offsets = [0, 64], sizes = [16, 32], strides = [1, 1]} : vector<16x128xf32> to vector<16x32xf32>
    %228 = arith.mulf %224, %227 : vector<16x32xf32>
    %229 = arith.addf %226, %228 : vector<16x32xf32>
    %230 = math.tanh %229 : vector<16x32xf32>
    %cst_70 = arith.constant 1.000000e+00 : f32
    %231 = vector.broadcast %cst_70 : f32 to vector<16x32xf32>
    %232 = arith.subf %231, %225 : vector<16x32xf32>
    %233 = arith.mulf %232, %230 : vector<16x32xf32>
    %234 = arith.mulf %225, %207 : vector<16x32xf32>
    %235 = arith.addf %233, %234 : vector<16x32xf32>
    %c8_i32 = arith.constant 8 : i32
    %236 = arith.index_cast %c8_i32 : i32 to index
    %c0_71 = arith.constant 0 : index
    %c0_72 = arith.constant 0 : index
    %237 = vector.load %arg12[%236, %c0_71, %c0_72] : memref<16x16x128xf32, #tpu.memory_space<vmem>>, vector<1x16x128xf32>
    %238 = vector.shape_cast %237 : vector<1x16x128xf32> to vector<16x128xf32>
    %cst_73 = arith.constant dense<0.000000e+00> : vector<16x128xf32>
    %239 = tpu.matmul %235, %9, %cst_73 {dimension_numbers = #tpu.dot_dimension_numbers<[1], [0], [0], [1], [0, 0, 1, 1], [], []>} : vector<16x32xf32>, vector<32x128xf32>, vector<16x128xf32> -> vector<16x128xf32>
    %240 = vector.broadcast %10 : vector<1x128xf32> to vector<16x128xf32>
    %241 = arith.addf %239, %240 : vector<16x128xf32>
    %242 = vector.extract_strided_slice %238 {offsets = [0, 0], sizes = [16, 64], strides = [1, 1]} : vector<16x128xf32> to vector<16x64xf32>
    %243 = vector.extract_strided_slice %241 {offsets = [0, 0], sizes = [16, 64], strides = [1, 1]} : vector<16x128xf32> to vector<16x64xf32>
    %244 = arith.addf %242, %243 : vector<16x64xf32>
    %cst_74 = arith.constant 5.000000e-01 : f32
    %245 = vector.broadcast %cst_74 : f32 to vector<16x64xf32>
    %246 = arith.mulf %245, %244 : vector<16x64xf32>
    %247 = math.tanh %246 : vector<16x64xf32>
    %cst_75 = arith.constant 1.000000e+00 : f32
    %248 = vector.broadcast %cst_75 : f32 to vector<16x64xf32>
    %249 = arith.addf %247, %248 : vector<16x64xf32>
    %cst_76 = arith.constant 5.000000e-01 : f32
    %250 = vector.broadcast %cst_76 : f32 to vector<16x64xf32>
    %251 = arith.mulf %250, %249 : vector<16x64xf32>
    %252 = vector.extract_strided_slice %251 {offsets = [0, 0], sizes = [16, 32], strides = [1, 1]} : vector<16x64xf32> to vector<16x32xf32>
    %253 = vector.extract_strided_slice %251 {offsets = [0, 32], sizes = [16, 32], strides = [1, 1]} : vector<16x64xf32> to vector<16x32xf32>
    %254 = vector.extract_strided_slice %238 {offsets = [0, 64], sizes = [16, 32], strides = [1, 1]} : vector<16x128xf32> to vector<16x32xf32>
    %255 = vector.extract_strided_slice %241 {offsets = [0, 64], sizes = [16, 32], strides = [1, 1]} : vector<16x128xf32> to vector<16x32xf32>
    %256 = arith.mulf %252, %255 : vector<16x32xf32>
    %257 = arith.addf %254, %256 : vector<16x32xf32>
    %258 = math.tanh %257 : vector<16x32xf32>
    %cst_77 = arith.constant 1.000000e+00 : f32
    %259 = vector.broadcast %cst_77 : f32 to vector<16x32xf32>
    %260 = arith.subf %259, %253 : vector<16x32xf32>
    %261 = arith.mulf %260, %258 : vector<16x32xf32>
    %262 = arith.mulf %253, %235 : vector<16x32xf32>
    %263 = arith.addf %261, %262 : vector<16x32xf32>
    %c9_i32 = arith.constant 9 : i32
    %264 = arith.index_cast %c9_i32 : i32 to index
    %c0_78 = arith.constant 0 : index
    %c0_79 = arith.constant 0 : index
    %265 = vector.load %arg12[%264, %c0_78, %c0_79] : memref<16x16x128xf32, #tpu.memory_space<vmem>>, vector<1x16x128xf32>
    %266 = vector.shape_cast %265 : vector<1x16x128xf32> to vector<16x128xf32>
    %cst_80 = arith.constant dense<0.000000e+00> : vector<16x128xf32>
    %267 = tpu.matmul %263, %9, %cst_80 {dimension_numbers = #tpu.dot_dimension_numbers<[1], [0], [0], [1], [0, 0, 1, 1], [], []>} : vector<16x32xf32>, vector<32x128xf32>, vector<16x128xf32> -> vector<16x128xf32>
    %268 = vector.broadcast %10 : vector<1x128xf32> to vector<16x128xf32>
    %269 = arith.addf %267, %268 : vector<16x128xf32>
    %270 = vector.extract_strided_slice %266 {offsets = [0, 0], sizes = [16, 64], strides = [1, 1]} : vector<16x128xf32> to vector<16x64xf32>
    %271 = vector.extract_strided_slice %269 {offsets = [0, 0], sizes = [16, 64], strides = [1, 1]} : vector<16x128xf32> to vector<16x64xf32>
    %272 = arith.addf %270, %271 : vector<16x64xf32>
    %cst_81 = arith.constant 5.000000e-01 : f32
    %273 = vector.broadcast %cst_81 : f32 to vector<16x64xf32>
    %274 = arith.mulf %273, %272 : vector<16x64xf32>
    %275 = math.tanh %274 : vector<16x64xf32>
    %cst_82 = arith.constant 1.000000e+00 : f32
    %276 = vector.broadcast %cst_82 : f32 to vector<16x64xf32>
    %277 = arith.addf %275, %276 : vector<16x64xf32>
    %cst_83 = arith.constant 5.000000e-01 : f32
    %278 = vector.broadcast %cst_83 : f32 to vector<16x64xf32>
    %279 = arith.mulf %278, %277 : vector<16x64xf32>
    %280 = vector.extract_strided_slice %279 {offsets = [0, 0], sizes = [16, 32], strides = [1, 1]} : vector<16x64xf32> to vector<16x32xf32>
    %281 = vector.extract_strided_slice %279 {offsets = [0, 32], sizes = [16, 32], strides = [1, 1]} : vector<16x64xf32> to vector<16x32xf32>
    %282 = vector.extract_strided_slice %266 {offsets = [0, 64], sizes = [16, 32], strides = [1, 1]} : vector<16x128xf32> to vector<16x32xf32>
    %283 = vector.extract_strided_slice %269 {offsets = [0, 64], sizes = [16, 32], strides = [1, 1]} : vector<16x128xf32> to vector<16x32xf32>
    %284 = arith.mulf %280, %283 : vector<16x32xf32>
    %285 = arith.addf %282, %284 : vector<16x32xf32>
    %286 = math.tanh %285 : vector<16x32xf32>
    %cst_84 = arith.constant 1.000000e+00 : f32
    %287 = vector.broadcast %cst_84 : f32 to vector<16x32xf32>
    %288 = arith.subf %287, %281 : vector<16x32xf32>
    %289 = arith.mulf %288, %286 : vector<16x32xf32>
    %290 = arith.mulf %281, %263 : vector<16x32xf32>
    %291 = arith.addf %289, %290 : vector<16x32xf32>
    %c10_i32 = arith.constant 10 : i32
    %292 = arith.index_cast %c10_i32 : i32 to index
    %c0_85 = arith.constant 0 : index
    %c0_86 = arith.constant 0 : index
    %293 = vector.load %arg12[%292, %c0_85, %c0_86] : memref<16x16x128xf32, #tpu.memory_space<vmem>>, vector<1x16x128xf32>
    %294 = vector.shape_cast %293 : vector<1x16x128xf32> to vector<16x128xf32>
    %cst_87 = arith.constant dense<0.000000e+00> : vector<16x128xf32>
    %295 = tpu.matmul %291, %9, %cst_87 {dimension_numbers = #tpu.dot_dimension_numbers<[1], [0], [0], [1], [0, 0, 1, 1], [], []>} : vector<16x32xf32>, vector<32x128xf32>, vector<16x128xf32> -> vector<16x128xf32>
    %296 = vector.broadcast %10 : vector<1x128xf32> to vector<16x128xf32>
    %297 = arith.addf %295, %296 : vector<16x128xf32>
    %298 = vector.extract_strided_slice %294 {offsets = [0, 0], sizes = [16, 64], strides = [1, 1]} : vector<16x128xf32> to vector<16x64xf32>
    %299 = vector.extract_strided_slice %297 {offsets = [0, 0], sizes = [16, 64], strides = [1, 1]} : vector<16x128xf32> to vector<16x64xf32>
    %300 = arith.addf %298, %299 : vector<16x64xf32>
    %cst_88 = arith.constant 5.000000e-01 : f32
    %301 = vector.broadcast %cst_88 : f32 to vector<16x64xf32>
    %302 = arith.mulf %301, %300 : vector<16x64xf32>
    %303 = math.tanh %302 : vector<16x64xf32>
    %cst_89 = arith.constant 1.000000e+00 : f32
    %304 = vector.broadcast %cst_89 : f32 to vector<16x64xf32>
    %305 = arith.addf %303, %304 : vector<16x64xf32>
    %cst_90 = arith.constant 5.000000e-01 : f32
    %306 = vector.broadcast %cst_90 : f32 to vector<16x64xf32>
    %307 = arith.mulf %306, %305 : vector<16x64xf32>
    %308 = vector.extract_strided_slice %307 {offsets = [0, 0], sizes = [16, 32], strides = [1, 1]} : vector<16x64xf32> to vector<16x32xf32>
    %309 = vector.extract_strided_slice %307 {offsets = [0, 32], sizes = [16, 32], strides = [1, 1]} : vector<16x64xf32> to vector<16x32xf32>
    %310 = vector.extract_strided_slice %294 {offsets = [0, 64], sizes = [16, 32], strides = [1, 1]} : vector<16x128xf32> to vector<16x32xf32>
    %311 = vector.extract_strided_slice %297 {offsets = [0, 64], sizes = [16, 32], strides = [1, 1]} : vector<16x128xf32> to vector<16x32xf32>
    %312 = arith.mulf %308, %311 : vector<16x32xf32>
    %313 = arith.addf %310, %312 : vector<16x32xf32>
    %314 = math.tanh %313 : vector<16x32xf32>
    %cst_91 = arith.constant 1.000000e+00 : f32
    %315 = vector.broadcast %cst_91 : f32 to vector<16x32xf32>
    %316 = arith.subf %315, %309 : vector<16x32xf32>
    %317 = arith.mulf %316, %314 : vector<16x32xf32>
    %318 = arith.mulf %309, %291 : vector<16x32xf32>
    %319 = arith.addf %317, %318 : vector<16x32xf32>
    %c11_i32 = arith.constant 11 : i32
    %320 = arith.index_cast %c11_i32 : i32 to index
    %c0_92 = arith.constant 0 : index
    %c0_93 = arith.constant 0 : index
    %321 = vector.load %arg12[%320, %c0_92, %c0_93] : memref<16x16x128xf32, #tpu.memory_space<vmem>>, vector<1x16x128xf32>
    %322 = vector.shape_cast %321 : vector<1x16x128xf32> to vector<16x128xf32>
    %cst_94 = arith.constant dense<0.000000e+00> : vector<16x128xf32>
    %323 = tpu.matmul %319, %9, %cst_94 {dimension_numbers = #tpu.dot_dimension_numbers<[1], [0], [0], [1], [0, 0, 1, 1], [], []>} : vector<16x32xf32>, vector<32x128xf32>, vector<16x128xf32> -> vector<16x128xf32>
    %324 = vector.broadcast %10 : vector<1x128xf32> to vector<16x128xf32>
    %325 = arith.addf %323, %324 : vector<16x128xf32>
    %326 = vector.extract_strided_slice %322 {offsets = [0, 0], sizes = [16, 64], strides = [1, 1]} : vector<16x128xf32> to vector<16x64xf32>
    %327 = vector.extract_strided_slice %325 {offsets = [0, 0], sizes = [16, 64], strides = [1, 1]} : vector<16x128xf32> to vector<16x64xf32>
    %328 = arith.addf %326, %327 : vector<16x64xf32>
    %cst_95 = arith.constant 5.000000e-01 : f32
    %329 = vector.broadcast %cst_95 : f32 to vector<16x64xf32>
    %330 = arith.mulf %329, %328 : vector<16x64xf32>
    %331 = math.tanh %330 : vector<16x64xf32>
    %cst_96 = arith.constant 1.000000e+00 : f32
    %332 = vector.broadcast %cst_96 : f32 to vector<16x64xf32>
    %333 = arith.addf %331, %332 : vector<16x64xf32>
    %cst_97 = arith.constant 5.000000e-01 : f32
    %334 = vector.broadcast %cst_97 : f32 to vector<16x64xf32>
    %335 = arith.mulf %334, %333 : vector<16x64xf32>
    %336 = vector.extract_strided_slice %335 {offsets = [0, 0], sizes = [16, 32], strides = [1, 1]} : vector<16x64xf32> to vector<16x32xf32>
    %337 = vector.extract_strided_slice %335 {offsets = [0, 32], sizes = [16, 32], strides = [1, 1]} : vector<16x64xf32> to vector<16x32xf32>
    %338 = vector.extract_strided_slice %322 {offsets = [0, 64], sizes = [16, 32], strides = [1, 1]} : vector<16x128xf32> to vector<16x32xf32>
    %339 = vector.extract_strided_slice %325 {offsets = [0, 64], sizes = [16, 32], strides = [1, 1]} : vector<16x128xf32> to vector<16x32xf32>
    %340 = arith.mulf %336, %339 : vector<16x32xf32>
    %341 = arith.addf %338, %340 : vector<16x32xf32>
    %342 = math.tanh %341 : vector<16x32xf32>
    %cst_98 = arith.constant 1.000000e+00 : f32
    %343 = vector.broadcast %cst_98 : f32 to vector<16x32xf32>
    %344 = arith.subf %343, %337 : vector<16x32xf32>
    %345 = arith.mulf %344, %342 : vector<16x32xf32>
    %346 = arith.mulf %337, %319 : vector<16x32xf32>
    %347 = arith.addf %345, %346 : vector<16x32xf32>
    %c12_i32 = arith.constant 12 : i32
    %348 = arith.index_cast %c12_i32 : i32 to index
    %c0_99 = arith.constant 0 : index
    %c0_100 = arith.constant 0 : index
    %349 = vector.load %arg12[%348, %c0_99, %c0_100] : memref<16x16x128xf32, #tpu.memory_space<vmem>>, vector<1x16x128xf32>
    %350 = vector.shape_cast %349 : vector<1x16x128xf32> to vector<16x128xf32>
    %cst_101 = arith.constant dense<0.000000e+00> : vector<16x128xf32>
    %351 = tpu.matmul %347, %9, %cst_101 {dimension_numbers = #tpu.dot_dimension_numbers<[1], [0], [0], [1], [0, 0, 1, 1], [], []>} : vector<16x32xf32>, vector<32x128xf32>, vector<16x128xf32> -> vector<16x128xf32>
    %352 = vector.broadcast %10 : vector<1x128xf32> to vector<16x128xf32>
    %353 = arith.addf %351, %352 : vector<16x128xf32>
    %354 = vector.extract_strided_slice %350 {offsets = [0, 0], sizes = [16, 64], strides = [1, 1]} : vector<16x128xf32> to vector<16x64xf32>
    %355 = vector.extract_strided_slice %353 {offsets = [0, 0], sizes = [16, 64], strides = [1, 1]} : vector<16x128xf32> to vector<16x64xf32>
    %356 = arith.addf %354, %355 : vector<16x64xf32>
    %cst_102 = arith.constant 5.000000e-01 : f32
    %357 = vector.broadcast %cst_102 : f32 to vector<16x64xf32>
    %358 = arith.mulf %357, %356 : vector<16x64xf32>
    %359 = math.tanh %358 : vector<16x64xf32>
    %cst_103 = arith.constant 1.000000e+00 : f32
    %360 = vector.broadcast %cst_103 : f32 to vector<16x64xf32>
    %361 = arith.addf %359, %360 : vector<16x64xf32>
    %cst_104 = arith.constant 5.000000e-01 : f32
    %362 = vector.broadcast %cst_104 : f32 to vector<16x64xf32>
    %363 = arith.mulf %362, %361 : vector<16x64xf32>
    %364 = vector.extract_strided_slice %363 {offsets = [0, 0], sizes = [16, 32], strides = [1, 1]} : vector<16x64xf32> to vector<16x32xf32>
    %365 = vector.extract_strided_slice %363 {offsets = [0, 32], sizes = [16, 32], strides = [1, 1]} : vector<16x64xf32> to vector<16x32xf32>
    %366 = vector.extract_strided_slice %350 {offsets = [0, 64], sizes = [16, 32], strides = [1, 1]} : vector<16x128xf32> to vector<16x32xf32>
    %367 = vector.extract_strided_slice %353 {offsets = [0, 64], sizes = [16, 32], strides = [1, 1]} : vector<16x128xf32> to vector<16x32xf32>
    %368 = arith.mulf %364, %367 : vector<16x32xf32>
    %369 = arith.addf %366, %368 : vector<16x32xf32>
    %370 = math.tanh %369 : vector<16x32xf32>
    %cst_105 = arith.constant 1.000000e+00 : f32
    %371 = vector.broadcast %cst_105 : f32 to vector<16x32xf32>
    %372 = arith.subf %371, %365 : vector<16x32xf32>
    %373 = arith.mulf %372, %370 : vector<16x32xf32>
    %374 = arith.mulf %365, %347 : vector<16x32xf32>
    %375 = arith.addf %373, %374 : vector<16x32xf32>
    %c13_i32 = arith.constant 13 : i32
    %376 = arith.index_cast %c13_i32 : i32 to index
    %c0_106 = arith.constant 0 : index
    %c0_107 = arith.constant 0 : index
    %377 = vector.load %arg12[%376, %c0_106, %c0_107] : memref<16x16x128xf32, #tpu.memory_space<vmem>>, vector<1x16x128xf32>
    %378 = vector.shape_cast %377 : vector<1x16x128xf32> to vector<16x128xf32>
    %cst_108 = arith.constant dense<0.000000e+00> : vector<16x128xf32>
    %379 = tpu.matmul %375, %9, %cst_108 {dimension_numbers = #tpu.dot_dimension_numbers<[1], [0], [0], [1], [0, 0, 1, 1], [], []>} : vector<16x32xf32>, vector<32x128xf32>, vector<16x128xf32> -> vector<16x128xf32>
    %380 = vector.broadcast %10 : vector<1x128xf32> to vector<16x128xf32>
    %381 = arith.addf %379, %380 : vector<16x128xf32>
    %382 = vector.extract_strided_slice %378 {offsets = [0, 0], sizes = [16, 64], strides = [1, 1]} : vector<16x128xf32> to vector<16x64xf32>
    %383 = vector.extract_strided_slice %381 {offsets = [0, 0], sizes = [16, 64], strides = [1, 1]} : vector<16x128xf32> to vector<16x64xf32>
    %384 = arith.addf %382, %383 : vector<16x64xf32>
    %cst_109 = arith.constant 5.000000e-01 : f32
    %385 = vector.broadcast %cst_109 : f32 to vector<16x64xf32>
    %386 = arith.mulf %385, %384 : vector<16x64xf32>
    %387 = math.tanh %386 : vector<16x64xf32>
    %cst_110 = arith.constant 1.000000e+00 : f32
    %388 = vector.broadcast %cst_110 : f32 to vector<16x64xf32>
    %389 = arith.addf %387, %388 : vector<16x64xf32>
    %cst_111 = arith.constant 5.000000e-01 : f32
    %390 = vector.broadcast %cst_111 : f32 to vector<16x64xf32>
    %391 = arith.mulf %390, %389 : vector<16x64xf32>
    %392 = vector.extract_strided_slice %391 {offsets = [0, 0], sizes = [16, 32], strides = [1, 1]} : vector<16x64xf32> to vector<16x32xf32>
    %393 = vector.extract_strided_slice %391 {offsets = [0, 32], sizes = [16, 32], strides = [1, 1]} : vector<16x64xf32> to vector<16x32xf32>
    %394 = vector.extract_strided_slice %378 {offsets = [0, 64], sizes = [16, 32], strides = [1, 1]} : vector<16x128xf32> to vector<16x32xf32>
    %395 = vector.extract_strided_slice %381 {offsets = [0, 64], sizes = [16, 32], strides = [1, 1]} : vector<16x128xf32> to vector<16x32xf32>
    %396 = arith.mulf %392, %395 : vector<16x32xf32>
    %397 = arith.addf %394, %396 : vector<16x32xf32>
    %398 = math.tanh %397 : vector<16x32xf32>
    %cst_112 = arith.constant 1.000000e+00 : f32
    %399 = vector.broadcast %cst_112 : f32 to vector<16x32xf32>
    %400 = arith.subf %399, %393 : vector<16x32xf32>
    %401 = arith.mulf %400, %398 : vector<16x32xf32>
    %402 = arith.mulf %393, %375 : vector<16x32xf32>
    %403 = arith.addf %401, %402 : vector<16x32xf32>
    %c14_i32 = arith.constant 14 : i32
    %404 = arith.index_cast %c14_i32 : i32 to index
    %c0_113 = arith.constant 0 : index
    %c0_114 = arith.constant 0 : index
    %405 = vector.load %arg12[%404, %c0_113, %c0_114] : memref<16x16x128xf32, #tpu.memory_space<vmem>>, vector<1x16x128xf32>
    %406 = vector.shape_cast %405 : vector<1x16x128xf32> to vector<16x128xf32>
    %cst_115 = arith.constant dense<0.000000e+00> : vector<16x128xf32>
    %407 = tpu.matmul %403, %9, %cst_115 {dimension_numbers = #tpu.dot_dimension_numbers<[1], [0], [0], [1], [0, 0, 1, 1], [], []>} : vector<16x32xf32>, vector<32x128xf32>, vector<16x128xf32> -> vector<16x128xf32>
    %408 = vector.broadcast %10 : vector<1x128xf32> to vector<16x128xf32>
    %409 = arith.addf %407, %408 : vector<16x128xf32>
    %410 = vector.extract_strided_slice %406 {offsets = [0, 0], sizes = [16, 64], strides = [1, 1]} : vector<16x128xf32> to vector<16x64xf32>
    %411 = vector.extract_strided_slice %409 {offsets = [0, 0], sizes = [16, 64], strides = [1, 1]} : vector<16x128xf32> to vector<16x64xf32>
    %412 = arith.addf %410, %411 : vector<16x64xf32>
    %cst_116 = arith.constant 5.000000e-01 : f32
    %413 = vector.broadcast %cst_116 : f32 to vector<16x64xf32>
    %414 = arith.mulf %413, %412 : vector<16x64xf32>
    %415 = math.tanh %414 : vector<16x64xf32>
    %cst_117 = arith.constant 1.000000e+00 : f32
    %416 = vector.broadcast %cst_117 : f32 to vector<16x64xf32>
    %417 = arith.addf %415, %416 : vector<16x64xf32>
    %cst_118 = arith.constant 5.000000e-01 : f32
    %418 = vector.broadcast %cst_118 : f32 to vector<16x64xf32>
    %419 = arith.mulf %418, %417 : vector<16x64xf32>
    %420 = vector.extract_strided_slice %419 {offsets = [0, 0], sizes = [16, 32], strides = [1, 1]} : vector<16x64xf32> to vector<16x32xf32>
    %421 = vector.extract_strided_slice %419 {offsets = [0, 32], sizes = [16, 32], strides = [1, 1]} : vector<16x64xf32> to vector<16x32xf32>
    %422 = vector.extract_strided_slice %406 {offsets = [0, 64], sizes = [16, 32], strides = [1, 1]} : vector<16x128xf32> to vector<16x32xf32>
    %423 = vector.extract_strided_slice %409 {offsets = [0, 64], sizes = [16, 32], strides = [1, 1]} : vector<16x128xf32> to vector<16x32xf32>
    %424 = arith.mulf %420, %423 : vector<16x32xf32>
    %425 = arith.addf %422, %424 : vector<16x32xf32>
    %426 = math.tanh %425 : vector<16x32xf32>
    %cst_119 = arith.constant 1.000000e+00 : f32
    %427 = vector.broadcast %cst_119 : f32 to vector<16x32xf32>
    %428 = arith.subf %427, %421 : vector<16x32xf32>
    %429 = arith.mulf %428, %426 : vector<16x32xf32>
    %430 = arith.mulf %421, %403 : vector<16x32xf32>
    %431 = arith.addf %429, %430 : vector<16x32xf32>
    %c15_i32 = arith.constant 15 : i32
    %432 = arith.index_cast %c15_i32 : i32 to index
    %c0_120 = arith.constant 0 : index
    %c0_121 = arith.constant 0 : index
    %433 = vector.load %arg12[%432, %c0_120, %c0_121] : memref<16x16x128xf32, #tpu.memory_space<vmem>>, vector<1x16x128xf32>
    %434 = vector.shape_cast %433 : vector<1x16x128xf32> to vector<16x128xf32>
    %cst_122 = arith.constant dense<0.000000e+00> : vector<16x128xf32>
    %435 = tpu.matmul %431, %9, %cst_122 {dimension_numbers = #tpu.dot_dimension_numbers<[1], [0], [0], [1], [0, 0, 1, 1], [], []>} : vector<16x32xf32>, vector<32x128xf32>, vector<16x128xf32> -> vector<16x128xf32>
    %436 = vector.broadcast %10 : vector<1x128xf32> to vector<16x128xf32>
    %437 = arith.addf %435, %436 : vector<16x128xf32>
    %438 = vector.extract_strided_slice %434 {offsets = [0, 0], sizes = [16, 64], strides = [1, 1]} : vector<16x128xf32> to vector<16x64xf32>
    %439 = vector.extract_strided_slice %437 {offsets = [0, 0], sizes = [16, 64], strides = [1, 1]} : vector<16x128xf32> to vector<16x64xf32>
    %440 = arith.addf %438, %439 : vector<16x64xf32>
    %cst_123 = arith.constant 5.000000e-01 : f32
    %441 = vector.broadcast %cst_123 : f32 to vector<16x64xf32>
    %442 = arith.mulf %441, %440 : vector<16x64xf32>
    %443 = math.tanh %442 : vector<16x64xf32>
    %cst_124 = arith.constant 1.000000e+00 : f32
    %444 = vector.broadcast %cst_124 : f32 to vector<16x64xf32>
    %445 = arith.addf %443, %444 : vector<16x64xf32>
    %cst_125 = arith.constant 5.000000e-01 : f32
    %446 = vector.broadcast %cst_125 : f32 to vector<16x64xf32>
    %447 = arith.mulf %446, %445 : vector<16x64xf32>
    %448 = vector.extract_strided_slice %447 {offsets = [0, 0], sizes = [16, 32], strides = [1, 1]} : vector<16x64xf32> to vector<16x32xf32>
    %449 = vector.extract_strided_slice %447 {offsets = [0, 32], sizes = [16, 32], strides = [1, 1]} : vector<16x64xf32> to vector<16x32xf32>
    %450 = vector.extract_strided_slice %434 {offsets = [0, 64], sizes = [16, 32], strides = [1, 1]} : vector<16x128xf32> to vector<16x32xf32>
    %451 = vector.extract_strided_slice %437 {offsets = [0, 64], sizes = [16, 32], strides = [1, 1]} : vector<16x128xf32> to vector<16x32xf32>
    %452 = arith.mulf %448, %451 : vector<16x32xf32>
    %453 = arith.addf %450, %452 : vector<16x32xf32>
    %454 = math.tanh %453 : vector<16x32xf32>
    %cst_126 = arith.constant 1.000000e+00 : f32
    %455 = vector.broadcast %cst_126 : f32 to vector<16x32xf32>
    %456 = arith.subf %455, %449 : vector<16x32xf32>
    %457 = arith.mulf %456, %454 : vector<16x32xf32>
    %458 = arith.mulf %449, %431 : vector<16x32xf32>
    %459 = arith.addf %457, %458 : vector<16x32xf32>
    %c16_i32 = arith.constant 16 : i32
    %460 = vector.extract_strided_slice %459 {offsets = [0, 0], sizes = [8, 32], strides = [1, 1]} : vector<16x32xf32> to vector<8x32xf32>
    %461 = vector.extract_strided_slice %459 {offsets = [8, 0], sizes = [8, 32], strides = [1, 1]} : vector<16x32xf32> to vector<8x32xf32>
    %c0_127 = arith.constant 0 : index
    %c0_128 = arith.constant 0 : index
    %462 = vector.load %arg6[%c0_127, %c0_128] : memref<32x128xf32, #tpu.memory_space<vmem>>, vector<32x128xf32>
    %cst_129 = arith.constant dense<0.000000e+00> : vector<8x128xf32>
    %463 = tpu.matmul %461, %462, %cst_129 {dimension_numbers = #tpu.dot_dimension_numbers<[1], [0], [0], [1], [0, 0, 1, 1], [], []>} : vector<8x32xf32>, vector<32x128xf32>, vector<8x128xf32> -> vector<8x128xf32>
    %c0_130 = arith.constant 0 : index
    %c0_131 = arith.constant 0 : index
    %464 = vector.load %arg7[%c0_130, %c0_131] : memref<32x128xf32, #tpu.memory_space<vmem>>, vector<32x128xf32>
    %cst_132 = arith.constant dense<0.000000e+00> : vector<8x128xf32>
    %465 = tpu.matmul %460, %464, %cst_132 {dimension_numbers = #tpu.dot_dimension_numbers<[1], [0], [0], [1], [0, 0, 1, 1], [], []>} : vector<8x32xf32>, vector<32x128xf32>, vector<8x128xf32> -> vector<8x128xf32>
    %466 = arith.addf %463, %465 : vector<8x128xf32>
    %c0_133 = arith.constant 0 : index
    %c0_134 = arith.constant 0 : index
    %467 = vector.load %arg8[%c0_133, %c0_134] : memref<1x128xf32, #tpu.memory_space<vmem>>, vector<1x128xf32>
    %468 = vector.broadcast %467 : vector<1x128xf32> to vector<8x128xf32>
    %469 = arith.addf %466, %468 : vector<8x128xf32>
    %470 = math.tanh %469 : vector<8x128xf32>
    %c0_135 = arith.constant 0 : index
    %c0_136 = arith.constant 0 : index
    %471 = vector.load %arg9[%c0_135, %c0_136] : memref<1x128xf32, #tpu.memory_space<vmem>>, vector<1x128xf32>
    %472 = vector.broadcast %471 : vector<1x128xf32> to vector<8x128xf32>
    %473 = arith.mulf %470, %472 : vector<8x128xf32>
    %cst_137 = arith.constant dense<0.000000e+00> : vector<8xf32>
    %474 = vector.multi_reduction <add>, %473, %cst_137 [1] : vector<8x128xf32> to vector<8xf32>
    %475 = vector.shape_cast %474 : vector<8xf32> to vector<8x1xf32>
    %c0_138 = arith.constant 0 : index
    %c0_139 = arith.constant 0 : index
    %476 = vector.load %arg10[%c0_138, %c0_139] : memref<1x1xf32, #tpu.memory_space<vmem>>, vector<1x1xf32>
    %477 = vector.broadcast %476 : vector<1x1xf32> to vector<8x1xf32>
    %478 = arith.addf %475, %477 : vector<8x1xf32>
    %479 = math.tanh %478 : vector<8x1xf32>
    %c0_140 = arith.constant 0 : index
    %c0_141 = arith.constant 0 : index
    %480 = vector.load %arg11[%c0_140, %c0_141] : memref<8x1xf32, #tpu.memory_space<vmem>>, vector<8x1xf32>
    tpu.vector_store %arg11[%c0_140, %c0_141], %479 {strides = array<i32>} : memref<8x1xf32, #tpu.memory_space<vmem>>, vector<8x1xf32>,
    return
  }
  func.func @transform_0(%arg0: i32) -> (i32, i32, i32, i32) {
    %c0_i32 = arith.constant 0 : i32
    %c0_i32_0 = arith.constant 0 : i32
    %c0_i32_1 = arith.constant 0 : i32
    %c0_i32_2 = arith.constant 0 : i32
    return %c0_i32, %c0_i32_0, %arg0, %c0_i32_1 : i32, i32, i32, i32
  }
  func.func @transform_1(%arg0: i32) -> (i32, i32) {
    %c0_i32 = arith.constant 0 : i32
    %c0_i32_0 = arith.constant 0 : i32
    %c0_i32_1 = arith.constant 0 : i32
    return %c0_i32, %c0_i32_0 : i32, i32
  }
  func.func @transform_2(%arg0: i32) -> (i32, i32) {
    %c0_i32 = arith.constant 0 : i32
    %c0_i32_0 = arith.constant 0 : i32
    %c0_i32_1 = arith.constant 0 : i32
    return %c0_i32, %c0_i32_0 : i32, i32
  }
  func.func @transform_3(%arg0: i32) -> (i32, i32) {
    %c0_i32 = arith.constant 0 : i32
    %c0_i32_0 = arith.constant 0 : i32
    %c0_i32_1 = arith.constant 0 : i32
    return %c0_i32, %c0_i32_0 : i32, i32
  }
  func.func @transform_4(%arg0: i32) -> (i32, i32) {
    %c0_i32 = arith.constant 0 : i32
    %c0_i32_0 = arith.constant 0 : i32
    %c0_i32_1 = arith.constant 0 : i32
    return %c0_i32, %c0_i32_0 : i32, i32
  }
  func.func @transform_5(%arg0: i32) -> (i32, i32) {
    %c0_i32 = arith.constant 0 : i32
    %c0_i32_0 = arith.constant 0 : i32
    %c0_i32_1 = arith.constant 0 : i32
    return %c0_i32, %c0_i32_0 : i32, i32
  }
  func.func @transform_6(%arg0: i32) -> (i32, i32) {
    %c0_i32 = arith.constant 0 : i32
    %c0_i32_0 = arith.constant 0 : i32
    %c0_i32_1 = arith.constant 0 : i32
    return %c0_i32, %c0_i32_0 : i32, i32
  }
  func.func @transform_7(%arg0: i32) -> (i32, i32) {
    %c0_i32 = arith.constant 0 : i32
    %c0_i32_0 = arith.constant 0 : i32
    %c0_i32_1 = arith.constant 0 : i32
    return %c0_i32, %c0_i32_0 : i32, i32
  }
  func.func @transform_8(%arg0: i32) -> (i32, i32) {
    %c0_i32 = arith.constant 0 : i32
    %c0_i32_0 = arith.constant 0 : i32
    %c0_i32_1 = arith.constant 0 : i32
    return %c0_i32, %c0_i32_0 : i32, i32
  }
  func.func @transform_9(%arg0: i32) -> (i32, i32) {
    %c0_i32 = arith.constant 0 : i32
    %c0_i32_0 = arith.constant 0 : i32
    %c0_i32_1 = arith.constant 0 : i32
    return %c0_i32, %c0_i32_0 : i32, i32
  }
  func.func @transform_10(%arg0: i32) -> (i32, i32) {
    %c0_i32 = arith.constant 0 : i32
    %c0_i32_0 = arith.constant 0 : i32
    return %arg0, %c0_i32 : i32, i32
  }
}

</mosaic_0001>

<bundles_post_ra>
// kernel: rnn_encoder_forward.1
= control target key start
LH: loop header
LB: loop body
LE: loop exit
PB: predicated region body
PF: predicated region fallthrough
CT: control target
= control target key end

     0   :  { %vm78_vm0 = vcmask 130048   ;;  %v3546_v3 = vmov 0.0   ;;  %s3547_s29 = smov 64   ;;  %s3548_s12 = smov 96   ;;  %vm445_vm1 = vcmask 261120   ;;  %vm3550_vm2 = vmmov 0   ;;  %s4174_s2 = inlined_call_operand.vmem [shape: f32[32,128], index: 2, kind: input, shape index: {}]   ;;  %s4175_s1 = inlined_call_operand.vmem [shape: f32[16,128], index: 1, kind: input, shape index: {}]   ;;  %s4176_s0 = inlined_call_operand.vmem [shape: f32[16,2,8,16], index: 0, kind: input, shape index: {}]   ;;  %s4177_s4 = inlined_call_operand.vmem [shape: f32[1,128], index: 4, kind: input, shape index: {}]   ;;  %s4178_s3 = inlined_call_operand.vmem [shape: f32[1,128], index: 3, kind: input, shape index: {}]   ;;  %s4179_s5 = inlined_call_operand.vmem [shape: f32[32,128], index: 5, kind: input, shape index: {}]   ;;  %s4180_s6 = inlined_call_operand.vmem [shape: f32[32,128], index: 6, kind: input, shape index: {}]   ;;  %s4181_s9 = inlined_call_operand.<no memory space> [shape: f32[1,1], index: 9, kind: input, shape index: {}]   ;;  %s4182_s7 = inlined_call_operand.vmem [shape: f32[1,128], index: 7, kind: input, shape index: {}]   ;;  %s4183_s8 = inlined_call_operand.vmem [shape: f32[1,128], index: 8, kind: input, shape index: {}]   ;;  %s4184_s10 = inlined_call_operand.vmem [shape: f32[8,1], index: 10, kind: output, shape index: {}]  }
   0x1   :  { %v432_v0 = vld [vmem:[%s4174_s2] sm:$0xff]  ;;  %v433_v1 = vld [vmem:[%s4174_s2 + $0x8] sm:$0xff]  ;;  %3073 = vmatprep.mubr.f32.mxu1 %v3546_v3  ;;  %v434_v6 = vld [vmem:[%s4174_s2 + $0x10] sm:$0xff]  ;;  %vm2798_vm3 = vcmask 7168  }
   0x2   :  { %v69_v2 = vld [vmem:[%s4175_s1] sm:$0xff]  ;;  %v3616_v4 = vpack.c.bf16 %v433_v1, %v432_v0  ;;  %v70_v5 = vld [vmem:[%s4175_s1 + $0x8] sm:$0xff]  ;;  %v435_v7 = vld [vmem:[%s4174_s2 + $0x18] sm:$0xff] }
   0x3   :  { %v3263_v8 = vpack.c.bf16 %v70_v5, %v69_v2  ;;  %v3627_v9 = vpack.c.bf16 %v435_v7, %v434_v6  ;;  %v37_v10 = vld [vmem:[%s4176_s0] sm:$0xff]  ;;  %v38_v11 = vld [vmem:[%s4176_s0 + $0x8] sm:$0xff]  ;;  %v39_v42 = vld [vmem:[%s4176_s0 + $0x10] sm:$0xff] }
   0x4   :  { %3268 = vmatprep.subr.bf16.mxu1 %v3616_v4  ;;  %3017 = vmatprep.mubr.msk.f32.mxu0 %vm78_vm0, %v37_v10  ;;  %v3655_v14 = vld [vmem:[%s4177_s4] ss:$0 sm:$0xff]  ;;  %v40_v43 = vld [vmem:[%s4176_s0 + $0x18] sm:$0xff] }
   0x5   :  { %3270 = vmatpush3.bf16.msra.mxu1 %v3616_v4  ;;  %3264 = vmatprep.subr.bf16.mxu0 %v3263_v8  ;;  %v3664_v19 = vld [vmem:[%s4178_s3] ss:$0 sm:$0xff] }
   0x6   :  { %3272 = vmatprep.subr.bf16.mxu1 %v3627_v9  ;;  %3266 = vmatpush3.bf16.msra.mxu0 %v3263_v8 }
   0x7   :  { %3332 = vmatprep.subr.bf16.mxu0 %v3616_v4 }
   0x9   :  { %3274 = vmatpush3.bf16.msra.mxu1 %v3627_v9  ;;  %3018 = vmatmul.mubr.msk.f32.vlgmr.msra.gmra.mrb[0].mxu0 %vm78_vm0, %v38_v11 }
   0xa   :  { %3276 = vmatprep.subr.bf16.mxu1 %v3616_v4  ;;  %3334 = vmatpush3.bf16.msra.mxu0 %v3616_v4 }
   0xb   :  { %3336 = vmatprep.subr.bf16.mxu0 %v3627_v9  ;;  %3020 = vmatprep.mubr.msk.f32.mxu0 %vm78_vm0, %v39_v42 }
   0xc   :  { %3074 = vmatmul.mubr.f32.vlgmr.msra.gmra.mrb[0].mxu1 %v3546_v3 }
   0xd   :  { %3278 = vmatpush3.bf16.msra.mxu1 %v3616_v4  ;;  %3021 = vmatmul.mubr.msk.f32.gmra.mrb[2].mxu0 %vm78_vm0, %v40_v43 }
   0xe   :  { %3280 = vmatprep.subr.bf16.mxu1 %v3627_v9  ;;  %3338 = vmatpush3.bf16.msra.mxu0 %v3627_v9 }
   0xf   :  { %3348 = vmatprep.subr.bf16.mxu0 %v3616_v4 }
  0x11   :  { %3282 = vmatpush3.bf16.msra.mxu1 %v3627_v9 }
  0x12   :  { %3284 = vmatprep.subr.bf16.mxu1 %v3616_v4 }
  0xdc   :  { %v3019_v12 = vpop.f32.mrb[0].mxu0 }
  0xdd   :  { %v241_v13 = vpop.f32.mrb[1].mxu0  ;;  %v247_v21 = vadd.f32 %v3019_v12, %v3664_v19 }
  0xde   :  { %v242_v20 = vadd.f32 %v3664_v19, %v241_v13 }
  0xdf   :  { %v3075_v15 = vpop.f32.mrb[0].mxu1 }
  0xe0   :  { %v515_v16 = vpop.f32.mrb[1].mxu1  ;;  %v521_v18 = vadd.f32 %v3075_v15, %v3655_v14  ;;  %v3022_v56 = vpop.f32.mrb[2].mxu0 }
  0xe1   :  { %v516_v17 = vadd.f32 %v3655_v14, %v515_v16  ;;  %v251_v57 = vpop.f32.mrb[3].mxu0  ;;  %v257_v62 = vadd.f32 %v3022_v56, %v3664_v19 }
  0xe2   :  { %v525_v23 = vadd.f32 %v521_v18, %v247_v21  ;;  %v252_v63 = vadd.f32 %v3664_v19, %v251_v57 }
  0xe3   :  { %536 = vrot.lane.b32.xlu0 %v516_v17, %s3547_s29  ;;  %v524_v22 = vadd.f32 %v516_v17, %v242_v20 }
  0xe4   :  { %v527_v25 = vmul.f32 0.5, %v525_v23 }
  0xe5   :  { %v526_v24 = vmul.f32 0.5, %v524_v22 }
  0xe7   :  { %538 = vrot.lane.b32.xlu0 %v521_v18, %s3547_s29  ;;  %3412 = vtanh.f32 %v526_v24 }
  0xe8   :  { %3414 = vtanh.f32 %v527_v25  ;;  %v41_v25 = vld [vmem:[%s4176_s0 + $0x20] sm:$0xff] }
  0xe9   :  { %3023 = vmatprep.mubr.msk.f32.mxu0 %vm78_vm0, %v41_v25 }
  0xf1   :  { %v3413_v26 = vpop.eup %3412 }
  0xf2   :  { %v530_v27 = vadd.f32 1.0, %v3413_v26  ;;  %v3415_v28 = vpop.eup %3414  ;;  %v42_v26 = vld [vmem:[%s4176_s0 + $0x28] sm:$0xff] }
  0xf3   :  { %v531_v29 = vadd.f32 1.0, %v3415_v28  ;;  %3024 = vmatmul.mubr.msk.f32.gmra.mrb[4].mxu0 %vm78_vm0, %v42_v26 }
  0xf4   :  { %v532_v30 = vmul.f32 0.5, %v530_v27 }
  0xf5   :  { %v533_v33 = vmul.f32 0.5, %v531_v29 }
  0xf6   :  { %v556_v44 = vsub.f32 1.0, %v532_v30  ;;  %v568_v46 = vmul.f32 0.0, %v532_v30 }
  0xf7   :  { %v557_v49 = vsub.f32 1.0, %v533_v33  ;;  %v569_v51 = vmul.f32 0.0, %v533_v33 }
 0x155   :  { %v537_v31 = vpop.permute.xlu0 %536 }
 0x156   :  { %v542_v32 = vmul.f32 %v537_v31, %v532_v30 }
 0x158   :  { %546 = vrot.lane.b32.xlu1 %v542_v32, %s3547_s29 }
 0x159   :  { %v539_v34 = vpop.permute.xlu0 %538 }
 0x15a   :  { %v543_v35 = vmul.f32 %v539_v34, %v533_v33 }
 0x15c   :  { %548 = vrot.lane.b32.xlu1 %v543_v35, %s3547_s29 }
 0x1ca   :  { %v547_v36 = vpop.permute.xlu1 %546 }
 0x1cb   :  { %v552_v37 = vadd.f32 %v547_v36, %v242_v20 }
 0x1cd   :  { %3416 = vtanh.f32 %v552_v37 }
 0x1ce   :  { %v549_v38 = vpop.permute.xlu1 %548 }
 0x1cf   :  { %v553_v39 = vadd.f32 %v549_v38, %v247_v21 }
 0x1d1   :  { %3418 = vtanh.f32 %v553_v39  ;;  %v3025_v39 = vpop.f32.mrb[4].mxu0 }
 0x1d7   :  { %v3417_v40 = vpop.eup %3416 }
 0x1d8   :  { %560 = vrot.lane.b32.xlu0 %v3417_v40, %s3548_s12  ;;  %v261_v40 = vpop.f32.mrb[5].mxu0 }
 0x1db   :  { %v3419_v41 = vpop.eup %3418 }
 0x1dc   :  { %562 = vrot.lane.b32.xlu1 %v3419_v41, %s3548_s12 }
 0x24a   :  { %v561_v45 = vpop.permute.xlu0 %560 }
 0x24b   :  { %v566_v47 = vmul.f32 %v561_v45, %v556_v44  ;;  %v267_v45 = vadd.f32 %v3025_v39, %v3664_v19 }
 0x24d   :  { %v3680_v48 = vadd.f32 %v568_v46, %v566_v47  ;;  %v262_v46 = vadd.f32 %v3664_v19, %v261_v40 }
 0x24e   :  { %v563_v50 = vpop.permute.xlu1 %562 }
 0x24f   :  { %v567_v52 = vmul.f32 %v563_v50, %v557_v49  ;;  %577 = vrot.lane.b32.xlu0 %v3680_v48, %s3548_s12 }
 0x251   :  { %v571_v53 = vadd.f32 %v569_v51, %v567_v52 }
 0x253   :  { %579 = vrot.lane.b32.xlu1 %v571_v53, %s3548_s12 }
 0x2c1   :  { %v578_v54 = vpop.permute.xlu0 %577 }
 0x2c2   :  { %3084 = vmatprep.mubr.msk.f32.mxu1 %vm445_vm1, %v578_v54 }
 0x2c5   :  { %v580_v55 = vpop.permute.xlu1 %579 }
 0x2c6   :  { %3085 = vmatmul.mubr.msk.f32.vlgmr.msra.gmra.mrb[2].mxu1 %vm445_vm1, %v580_v55 }
 0x2c7   :  { %3286 = vmatpush3.bf16.msra.mxu1 %v3616_v4 }
 0x2c8   :  { %3288 = vmatprep.subr.bf16.mxu1 %v3627_v9 }
 0x2cb   :  { %3290 = vmatpush3.bf16.msra.mxu1 %v3627_v9 }
 0x2cc   :  { %3292 = vmatprep.subr.bf16.mxu1 %v3616_v4 }
 0x399   :  { %v3086_v58 = vpop.f32.mrb[2].mxu1 }
 0x39a   :  { %v657_v59 = vadd.f32 %v3086_v58, %v3655_v14  ;;  %v651_v60 = vpop.f32.mrb[3].mxu1 }
 0x39b   :  { %v652_v61 = vadd.f32 %v3655_v14, %v651_v60 }
 0x39c   :  { %674 = vrot.lane.b32.xlu1 %v657_v59, %s3547_s29  ;;  %v661_v0 = vadd.f32 %v657_v59, %v257_v62 }
 0x39d   :  { %672 = vrot.lane.b32.xlu0 %v652_v61, %s3547_s29  ;;  %v660_v1 = vadd.f32 %v652_v61, %v252_v63 }
 0x39e   :  { %v663_v2 = vmul.f32 0.5, %v661_v0 }
 0x39f   :  { %v662_v5 = vmul.f32 0.5, %v660_v1 }
 0x3a0   :  { %3420 = vtanh.f32 %v663_v2 }
 0x3a1   :  { %3422 = vtanh.f32 %v662_v5  ;;  %v43_v5 = vld [vmem:[%s4176_s0 + $0x30] sm:$0xff] }
 0x3a2   :  { %3026 = vmatprep.mubr.msk.f32.mxu0 %vm78_vm0, %v43_v5 }
 0x3aa   :  { %v3421_v6 = vpop.eup %3420 }
 0x3ab   :  { %v3423_v7 = vpop.eup %3422  ;;  %v667_v8 = vadd.f32 1.0, %v3421_v6  ;;  %v44_v6 = vld [vmem:[%s4176_s0 + $0x38] sm:$0xff] }
 0x3ac   :  { %v666_v10 = vadd.f32 1.0, %v3423_v7  ;;  %3027 = vmatmul.mubr.msk.f32.gmra.mrb[6].mxu0 %vm78_vm0, %v44_v6 }
 0x3ad   :  { %v669_v11 = vmul.f32 0.5, %v667_v8 }
 0x3ae   :  { %v668_v13 = vmul.f32 0.5, %v666_v10 }
 0x3af   :  { %v693_v27 = vsub.f32 1.0, %v669_v11  ;;  %v705_v30 = vmul.f32 %v669_v11, %v571_v53 }
 0x3b0   :  { %v692_v29 = vsub.f32 1.0, %v668_v13  ;;  %v704_v33 = vmul.f32 %v668_v13, %v3680_v48 }
 0x40e   :  { %v675_v12 = vpop.permute.xlu1 %674 }
 0x40f   :  { %v679_v15 = vmul.f32 %v675_v12, %v669_v11  ;;  %v673_v16 = vpop.permute.xlu0 %672 }
 0x410   :  { %v678_v17 = vmul.f32 %v673_v16, %v668_v13 }
 0x411   :  { %684 = vrot.lane.b32.xlu1 %v679_v15, %s3547_s29 }
 0x412   :  { %682 = vrot.lane.b32.xlu0 %v678_v17, %s3547_s29 }
 0x483   :  { %v685_v18 = vpop.permute.xlu1 %684 }
 0x484   :  { %v689_v20 = vadd.f32 %v685_v18, %v257_v62  ;;  %v683_v21 = vpop.permute.xlu0 %682 }
 0x485   :  { %v688_v22 = vadd.f32 %v683_v21, %v252_v63 }
 0x486   :  { %3424 = vtanh.f32 %v689_v20 }
 0x487   :  { %3426 = vtanh.f32 %v688_v22  ;;  %v3028_v22 = vpop.f32.mrb[6].mxu0 }
 0x490   :  { %v3425_v23 = vpop.eup %3424 }
 0x491   :  { %v3427_v24 = vpop.eup %3426  ;;  %698 = vrot.lane.b32.xlu1 %v3425_v23, %s3548_s12  ;;  %v271_v23 = vpop.f32.mrb[7].mxu0 }
 0x492   :  { %696 = vrot.lane.b32.xlu0 %v3427_v24, %s3548_s12 }
 0x503   :  { %v699_v28 = vpop.permute.xlu1 %698 }
 0x504   :  { %v703_v31 = vmul.f32 %v699_v28, %v693_v27  ;;  %v697_v32 = vpop.permute.xlu0 %696  ;;  %v277_v28 = vadd.f32 %v3028_v22, %v3664_v19 }
 0x505   :  { %v702_v34 = vmul.f32 %v697_v32, %v692_v29  ;;  %v272_v29 = vadd.f32 %v3664_v19, %v271_v23 }
 0x506   :  { %v707_v35 = vadd.f32 %v705_v30, %v703_v31 }
 0x507   :  { %v706_v36 = vadd.f32 %v704_v33, %v702_v34 }
 0x508   :  { %715 = vrot.lane.b32.xlu1 %v707_v35, %s3548_s12 }
 0x509   :  { %713 = vrot.lane.b32.xlu0 %v706_v36, %s3548_s12 }
 0x57a   :  { %v716_v38 = vpop.permute.xlu1 %715 }
 0x57b   :  { %v714_v37 = vpop.permute.xlu0 %713 }
 0x57c   :  { %3095 = vmatprep.mubr.msk.f32.mxu1 %vm445_vm1, %v714_v37 }
 0x57d   :  { %3096 = vmatmul.mubr.msk.f32.vlgmr.msra.gmra.mrb[4].mxu1 %vm445_vm1, %v716_v38 }
 0x57e   :  { %3294 = vmatpush3.bf16.msra.mxu1 %v3616_v4 }
 0x57f   :  { %3296 = vmatprep.subr.bf16.mxu1 %v3627_v9 }
 0x582   :  { %3298 = vmatpush3.bf16.msra.mxu1 %v3627_v9 }
 0x583   :  { %3300 = vmatprep.subr.bf16.mxu1 %v3616_v4 }
 0x650   :  { %v3097_v41 = vpop.f32.mrb[4].mxu1 }
 0x651   :  { %v793_v42 = vadd.f32 %v3097_v41, %v3655_v14  ;;  %v787_v43 = vpop.f32.mrb[5].mxu1 }
 0x652   :  { %v788_v44 = vadd.f32 %v3655_v14, %v787_v43 }
 0x653   :  { %810 = vrot.lane.b32.xlu1 %v793_v42, %s3547_s29  ;;  %v797_v47 = vadd.f32 %v793_v42, %v267_v45 }
 0x654   :  { %808 = vrot.lane.b32.xlu0 %v788_v44, %s3547_s29  ;;  %v796_v48 = vadd.f32 %v788_v44, %v262_v46 }
 0x655   :  { %v799_v49 = vmul.f32 0.5, %v797_v47 }
 0x656   :  { %v798_v50 = vmul.f32 0.5, %v796_v48 }
 0x657   :  { %3428 = vtanh.f32 %v799_v49 }
 0x658   :  { %3430 = vtanh.f32 %v798_v50  ;;  %v45_v50 = vld [vmem:[%s4176_s0 + $0x40] sm:$0xff] }
 0x659   :  { %3029 = vmatprep.mubr.msk.f32.mxu0 %vm78_vm0, %v45_v50 }
 0x661   :  { %v3429_v51 = vpop.eup %3428 }
 0x662   :  { %v3431_v52 = vpop.eup %3430  ;;  %v803_v53 = vadd.f32 1.0, %v3429_v51  ;;  %v46_v51 = vld [vmem:[%s4176_s0 + $0x48] sm:$0xff] }
 0x663   :  { %v802_v54 = vadd.f32 1.0, %v3431_v52  ;;  %3030 = vmatmul.mubr.msk.f32.gmra.mrb[8].mxu0 %vm78_vm0, %v46_v51 }
 0x664   :  { %v805_v55 = vmul.f32 0.5, %v803_v53 }
 0x665   :  { %v804_v57 = vmul.f32 0.5, %v802_v54 }
 0x666   :  { %v829_v7 = vsub.f32 1.0, %v805_v55  ;;  %v841_v11 = vmul.f32 %v805_v55, %v707_v35 }
 0x667   :  { %v828_v10 = vsub.f32 1.0, %v804_v57  ;;  %v840_v15 = vmul.f32 %v804_v57, %v706_v36 }
 0x6c5   :  { %v811_v56 = vpop.permute.xlu1 %810 }
 0x6c6   :  { %v815_v58 = vmul.f32 %v811_v56, %v805_v55  ;;  %v809_v59 = vpop.permute.xlu0 %808 }
 0x6c7   :  { %v814_v60 = vmul.f32 %v809_v59, %v804_v57 }
 0x6c8   :  { %820 = vrot.lane.b32.xlu1 %v815_v58, %s3547_s29 }
 0x6c9   :  { %818 = vrot.lane.b32.xlu0 %v814_v60, %s3547_s29 }
 0x73a   :  { %v821_v61 = vpop.permute.xlu1 %820 }
 0x73b   :  { %v825_v62 = vadd.f32 %v821_v61, %v267_v45  ;;  %v819_v63 = vpop.permute.xlu0 %818 }
 0x73c   :  { %v824_v0 = vadd.f32 %v819_v63, %v262_v46 }
 0x73d   :  { %3432 = vtanh.f32 %v825_v62 }
 0x73e   :  { %3434 = vtanh.f32 %v824_v0  ;;  %v3031_v0 = vpop.f32.mrb[8].mxu0 }
 0x747   :  { %v3433_v1 = vpop.eup %3432 }
 0x748   :  { %v3435_v2 = vpop.eup %3434  ;;  %834 = vrot.lane.b32.xlu1 %v3433_v1, %s3548_s12  ;;  %v281_v1 = vpop.f32.mrb[9].mxu0 }
 0x749   :  { %832 = vrot.lane.b32.xlu0 %v3435_v2, %s3548_s12 }
 0x7ba   :  { %v835_v8 = vpop.permute.xlu1 %834 }
 0x7bb   :  { %v839_v12 = vmul.f32 %v835_v8, %v829_v7  ;;  %v833_v13 = vpop.permute.xlu0 %832  ;;  %v287_v8 = vadd.f32 %v3031_v0, %v3664_v19 }
 0x7bc   :  { %v838_v16 = vmul.f32 %v833_v13, %v828_v10  ;;  %v282_v10 = vadd.f32 %v3664_v19, %v281_v1 }
 0x7bd   :  { %v843_v17 = vadd.f32 %v841_v11, %v839_v12 }
 0x7be   :  { %v842_v18 = vadd.f32 %v840_v15, %v838_v16 }
 0x7bf   :  { %851 = vrot.lane.b32.xlu1 %v843_v17, %s3548_s12 }
 0x7c0   :  { %849 = vrot.lane.b32.xlu0 %v842_v18, %s3548_s12 }
 0x831   :  { %v852_v21 = vpop.permute.xlu1 %851 }
 0x832   :  { %v850_v20 = vpop.permute.xlu0 %849 }
 0x833   :  { %3106 = vmatprep.mubr.msk.f32.mxu1 %vm445_vm1, %v850_v20 }
 0x834   :  { %3107 = vmatmul.mubr.msk.f32.vlgmr.msra.gmra.mrb[6].mxu1 %vm445_vm1, %v852_v21 }
 0x835   :  { %3302 = vmatpush3.bf16.msra.mxu1 %v3616_v4 }
 0x836   :  { %3304 = vmatprep.subr.bf16.mxu1 %v3627_v9 }
 0x839   :  { %3306 = vmatpush3.bf16.msra.mxu1 %v3627_v9 }
 0x83a   :  { %3308 = vmatprep.subr.bf16.mxu1 %v3616_v4 }
 0x907   :  { %v3108_v24 = vpop.f32.mrb[6].mxu1 }
 0x908   :  { %v929_v25 = vadd.f32 %v3108_v24, %v3655_v14  ;;  %v923_v26 = vpop.f32.mrb[7].mxu1 }
 0x909   :  { %v924_v27 = vadd.f32 %v3655_v14, %v923_v26 }
 0x90a   :  { %946 = vrot.lane.b32.xlu1 %v929_v25, %s3547_s29  ;;  %v933_v30 = vadd.f32 %v929_v25, %v277_v28 }
 0x90b   :  { %944 = vrot.lane.b32.xlu0 %v924_v27, %s3547_s29  ;;  %v932_v31 = vadd.f32 %v924_v27, %v272_v29 }
 0x90c   :  { %v935_v32 = vmul.f32 0.5, %v933_v30 }
 0x90d   :  { %v934_v33 = vmul.f32 0.5, %v932_v31 }
 0x90e   :  { %3436 = vtanh.f32 %v935_v32 }
 0x90f   :  { %3438 = vtanh.f32 %v934_v33  ;;  %v47_v33 = vld [vmem:[%s4176_s0 + $0x50] sm:$0xff] }
 0x910   :  { %3032 = vmatprep.mubr.msk.f32.mxu0 %vm78_vm0, %v47_v33 }
 0x918   :  { %v3437_v34 = vpop.eup %3436 }
 0x919   :  { %v3439_v35 = vpop.eup %3438  ;;  %v939_v36 = vadd.f32 1.0, %v3437_v34  ;;  %v48_v34 = vld [vmem:[%s4176_s0 + $0x58] sm:$0xff] }
 0x91a   :  { %v938_v37 = vadd.f32 1.0, %v3439_v35  ;;  %3033 = vmatmul.mubr.msk.f32.gmra.mrb[10].mxu0 %vm78_vm0, %v48_v34 }
 0x91b   :  { %v941_v38 = vmul.f32 0.5, %v939_v36 }
 0x91c   :  { %v940_v40 = vmul.f32 0.5, %v938_v37 }
 0x91d   :  { %v965_v52 = vsub.f32 1.0, %v941_v38  ;;  %v977_v55 = vmul.f32 %v941_v38, %v843_v17 }
 0x91e   :  { %v964_v54 = vsub.f32 1.0, %v940_v40  ;;  %v976_v58 = vmul.f32 %v940_v40, %v842_v18 }
 0x97c   :  { %v947_v39 = vpop.permute.xlu1 %946 }
 0x97d   :  { %v951_v41 = vmul.f32 %v947_v39, %v941_v38  ;;  %v945_v42 = vpop.permute.xlu0 %944 }
 0x97e   :  { %v950_v43 = vmul.f32 %v945_v42, %v940_v40 }
 0x97f   :  { %956 = vrot.lane.b32.xlu1 %v951_v41, %s3547_s29 }
 0x980   :  { %954 = vrot.lane.b32.xlu0 %v950_v43, %s3547_s29 }
 0x9f1   :  { %v957_v44 = vpop.permute.xlu1 %956 }
 0x9f2   :  { %v961_v45 = vadd.f32 %v957_v44, %v277_v28  ;;  %v955_v46 = vpop.permute.xlu0 %954 }
 0x9f3   :  { %v960_v47 = vadd.f32 %v955_v46, %v272_v29 }
 0x9f4   :  { %3440 = vtanh.f32 %v961_v45 }
 0x9f5   :  { %3442 = vtanh.f32 %v960_v47  ;;  %v3034_v47 = vpop.f32.mrb[10].mxu0 }
 0x9fe   :  { %v3441_v48 = vpop.eup %3440 }
 0x9ff   :  { %v3443_v49 = vpop.eup %3442  ;;  %970 = vrot.lane.b32.xlu1 %v3441_v48, %s3548_s12  ;;  %v291_v48 = vpop.f32.mrb[11].mxu0 }
 0xa00   :  { %968 = vrot.lane.b32.xlu0 %v3443_v49, %s3548_s12 }
 0xa71   :  { %v971_v53 = vpop.permute.xlu1 %970 }
 0xa72   :  { %v975_v56 = vmul.f32 %v971_v53, %v965_v52  ;;  %v969_v57 = vpop.permute.xlu0 %968  ;;  %v297_v53 = vadd.f32 %v3034_v47, %v3664_v19 }
 0xa73   :  { %v974_v59 = vmul.f32 %v969_v57, %v964_v54  ;;  %v292_v54 = vadd.f32 %v3664_v19, %v291_v48 }
 0xa74   :  { %v979_v60 = vadd.f32 %v977_v55, %v975_v56 }
 0xa75   :  { %v978_v61 = vadd.f32 %v976_v58, %v974_v59 }
 0xa76   :  { %987 = vrot.lane.b32.xlu1 %v979_v60, %s3548_s12 }
 0xa77   :  { %985 = vrot.lane.b32.xlu0 %v978_v61, %s3548_s12 }
 0xae8   :  { %v988_v63 = vpop.permute.xlu1 %987 }
 0xae9   :  { %v986_v62 = vpop.permute.xlu0 %985 }
 0xaea   :  { %3117 = vmatprep.mubr.msk.f32.mxu1 %vm445_vm1, %v986_v62 }
 0xaeb   :  { %3118 = vmatmul.mubr.msk.f32.vlgmr.msra.gmra.mrb[8].mxu1 %vm445_vm1, %v988_v63 }
 0xaec   :  { %3310 = vmatpush3.bf16.msra.mxu1 %v3616_v4 }
 0xaed   :  { %3312 = vmatprep.subr.bf16.mxu1 %v3627_v9 }
 0xaf0   :  { %3314 = vmatpush3.bf16.msra.mxu1 %v3627_v9 }
 0xaf1   :  { %3316 = vmatprep.subr.bf16.mxu1 %v3616_v4 }
 0xbbe   :  { %v3119_v2 = vpop.f32.mrb[8].mxu1 }
 0xbbf   :  { %v1065_v5 = vadd.f32 %v3119_v2, %v3655_v14  ;;  %v1059_v6 = vpop.f32.mrb[9].mxu1 }
 0xbc0   :  { %v1060_v7 = vadd.f32 %v3655_v14, %v1059_v6 }
 0xbc1   :  { %1082 = vrot.lane.b32.xlu1 %v1065_v5, %s3547_s29  ;;  %v1069_v11 = vadd.f32 %v1065_v5, %v287_v8 }
 0xbc2   :  { %1080 = vrot.lane.b32.xlu0 %v1060_v7, %s3547_s29  ;;  %v1068_v12 = vadd.f32 %v1060_v7, %v282_v10 }
 0xbc3   :  { %v1071_v13 = vmul.f32 0.5, %v1069_v11 }
 0xbc4   :  { %v1070_v15 = vmul.f32 0.5, %v1068_v12 }
 0xbc5   :  { %3444 = vtanh.f32 %v1071_v13 }
 0xbc6   :  { %3446 = vtanh.f32 %v1070_v15  ;;  %v49_v15 = vld [vmem:[%s4176_s0 + $0x60] sm:$0xff] }
 0xbc7   :  { %3035 = vmatprep.mubr.msk.f32.mxu0 %vm78_vm0, %v49_v15 }
 0xbcf   :  { %v3445_v16 = vpop.eup %3444 }
 0xbd0   :  { %v3447_v17 = vpop.eup %3446  ;;  %v1075_v18 = vadd.f32 1.0, %v3445_v16  ;;  %v50_v16 = vld [vmem:[%s4176_s0 + $0x68] sm:$0xff] }
 0xbd1   :  { %v1074_v20 = vadd.f32 1.0, %v3447_v17  ;;  %3036 = vmatmul.mubr.msk.f32.gmra.mrb[12].mxu0 %vm78_vm0, %v50_v16 }
 0xbd2   :  { %v1077_v21 = vmul.f32 0.5, %v1075_v18 }
 0xbd3   :  { %v1076_v23 = vmul.f32 0.5, %v1074_v20 }
 0xbd4   :  { %v1101_v35 = vsub.f32 1.0, %v1077_v21  ;;  %v1113_v38 = vmul.f32 %v1077_v21, %v979_v60 }
 0xbd5   :  { %v1100_v37 = vsub.f32 1.0, %v1076_v23  ;;  %v1112_v41 = vmul.f32 %v1076_v23, %v978_v61 }
 0xc33   :  { %v1083_v22 = vpop.permute.xlu1 %1082 }
 0xc34   :  { %v1087_v24 = vmul.f32 %v1083_v22, %v1077_v21  ;;  %v1081_v25 = vpop.permute.xlu0 %1080 }
 0xc35   :  { %v1086_v26 = vmul.f32 %v1081_v25, %v1076_v23 }
 0xc36   :  { %1092 = vrot.lane.b32.xlu1 %v1087_v24, %s3547_s29 }
 0xc37   :  { %1090 = vrot.lane.b32.xlu0 %v1086_v26, %s3547_s29 }
 0xca8   :  { %v1093_v27 = vpop.permute.xlu1 %1092 }
 0xca9   :  { %v1097_v28 = vadd.f32 %v1093_v27, %v287_v8  ;;  %v1091_v29 = vpop.permute.xlu0 %1090 }
 0xcaa   :  { %v1096_v30 = vadd.f32 %v1091_v29, %v282_v10 }
 0xcab   :  { %3448 = vtanh.f32 %v1097_v28 }
 0xcac   :  { %3450 = vtanh.f32 %v1096_v30  ;;  %v3037_v30 = vpop.f32.mrb[12].mxu0 }
 0xcb5   :  { %v3449_v31 = vpop.eup %3448 }
 0xcb6   :  { %v3451_v32 = vpop.eup %3450  ;;  %1106 = vrot.lane.b32.xlu1 %v3449_v31, %s3548_s12  ;;  %v301_v31 = vpop.f32.mrb[13].mxu0 }
 0xcb7   :  { %1104 = vrot.lane.b32.xlu0 %v3451_v32, %s3548_s12 }
 0xd28   :  { %v1107_v36 = vpop.permute.xlu1 %1106 }
 0xd29   :  { %v1111_v39 = vmul.f32 %v1107_v36, %v1101_v35  ;;  %v1105_v40 = vpop.permute.xlu0 %1104  ;;  %v307_v36 = vadd.f32 %v3037_v30, %v3664_v19 }
 0xd2a   :  { %v1110_v42 = vmul.f32 %v1105_v40, %v1100_v37  ;;  %v302_v37 = vadd.f32 %v3664_v19, %v301_v31 }
 0xd2b   :  { %v1115_v43 = vadd.f32 %v1113_v38, %v1111_v39 }
 0xd2c   :  { %v1114_v44 = vadd.f32 %v1112_v41, %v1110_v42 }
 0xd2d   :  { %1123 = vrot.lane.b32.xlu1 %v1115_v43, %s3548_s12 }
 0xd2e   :  { %1121 = vrot.lane.b32.xlu0 %v1114_v44, %s3548_s12 }
 0xd9f   :  { %v1124_v46 = vpop.permute.xlu1 %1123 }
 0xda0   :  { %v1122_v45 = vpop.permute.xlu0 %1121 }
 0xda1   :  { %3128 = vmatprep.mubr.msk.f32.mxu1 %vm445_vm1, %v1122_v45 }
 0xda2   :  { %3129 = vmatmul.mubr.msk.f32.vlgmr.msra.gmra.mrb[10].mxu1 %vm445_vm1, %v1124_v46 }
 0xda3   :  { %3318 = vmatpush3.bf16.msra.mxu1 %v3616_v4 }
 0xda4   :  { %3320 = vmatprep.subr.bf16.mxu1 %v3627_v9 }
 0xda7   :  { %3322 = vmatpush3.bf16.msra.mxu1 %v3627_v9 }
 0xda8   :  { %3324 = vmatprep.subr.bf16.mxu1 %v3616_v4 }
 0xe75   :  { %v3130_v49 = vpop.f32.mrb[10].mxu1 }
 0xe76   :  { %v1201_v50 = vadd.f32 %v3130_v49, %v3655_v14  ;;  %v1195_v51 = vpop.f32.mrb[11].mxu1 }
 0xe77   :  { %v1196_v52 = vadd.f32 %v3655_v14, %v1195_v51 }
 0xe78   :  { %1218 = vrot.lane.b32.xlu1 %v1201_v50, %s3547_s29  ;;  %v1205_v55 = vadd.f32 %v1201_v50, %v297_v53 }
 0xe79   :  { %1216 = vrot.lane.b32.xlu0 %v1196_v52, %s3547_s29  ;;  %v1204_v56 = vadd.f32 %v1196_v52, %v292_v54 }
 0xe7a   :  { %v1207_v57 = vmul.f32 0.5, %v1205_v55 }
 0xe7b   :  { %v1206_v58 = vmul.f32 0.5, %v1204_v56 }
 0xe7c   :  { %3452 = vtanh.f32 %v1207_v57 }
 0xe7d   :  { %3454 = vtanh.f32 %v1206_v58  ;;  %v51_v58 = vld [vmem:[%s4176_s0 + $0x70] sm:$0xff] }
 0xe7e   :  { %3038 = vmatprep.mubr.msk.f32.mxu0 %vm78_vm0, %v51_v58 }
 0xe86   :  { %v3453_v59 = vpop.eup %3452 }
 0xe87   :  { %v3455_v60 = vpop.eup %3454  ;;  %v1211_v61 = vadd.f32 1.0, %v3453_v59  ;;  %v52_v59 = vld [vmem:[%s4176_s0 + $0x78] sm:$0xff] }
 0xe88   :  { %v1210_v62 = vadd.f32 1.0, %v3455_v60  ;;  %3039 = vmatmul.mubr.msk.f32.gmra.mrb[14].mxu0 %vm78_vm0, %v52_v59 }
 0xe89   :  { %v1213_v63 = vmul.f32 0.5, %v1211_v61 }
 0xe8a   :  { %v1212_v1 = vmul.f32 0.5, %v1210_v62 }
 0xe8b   :  { %v1237_v17 = vsub.f32 1.0, %v1213_v63  ;;  %v1249_v21 = vmul.f32 %v1213_v63, %v1115_v43 }
 0xe8c   :  { %v1236_v20 = vsub.f32 1.0, %v1212_v1  ;;  %v1248_v24 = vmul.f32 %v1212_v1, %v1114_v44 }
 0xeea   :  { %v1219_v0 = vpop.permute.xlu1 %1218 }
 0xeeb   :  { %v1223_v2 = vmul.f32 %v1219_v0, %v1213_v63  ;;  %v1217_v5 = vpop.permute.xlu0 %1216 }
 0xeec   :  { %v1222_v6 = vmul.f32 %v1217_v5, %v1212_v1 }
 0xeed   :  { %1228 = vrot.lane.b32.xlu1 %v1223_v2, %s3547_s29 }
 0xeee   :  { %1226 = vrot.lane.b32.xlu0 %v1222_v6, %s3547_s29 }
 0xf5f   :  { %v1229_v7 = vpop.permute.xlu1 %1228 }
 0xf60   :  { %v1233_v8 = vadd.f32 %v1229_v7, %v297_v53  ;;  %v1227_v10 = vpop.permute.xlu0 %1226 }
 0xf61   :  { %v1232_v11 = vadd.f32 %v1227_v10, %v292_v54 }
 0xf62   :  { %3456 = vtanh.f32 %v1233_v8 }
 0xf63   :  { %3458 = vtanh.f32 %v1232_v11  ;;  %v3040_v11 = vpop.f32.mrb[14].mxu0 }
 0xf6c   :  { %v3457_v12 = vpop.eup %3456 }
 0xf6d   :  { %v3459_v13 = vpop.eup %3458  ;;  %1242 = vrot.lane.b32.xlu1 %v3457_v12, %s3548_s12  ;;  %v311_v12 = vpop.f32.mrb[15].mxu0 }
 0xf6e   :  { %1240 = vrot.lane.b32.xlu0 %v3459_v13, %s3548_s12 }
 0xfdf   :  { %v1243_v18 = vpop.permute.xlu1 %1242 }
 0xfe0   :  { %v1247_v22 = vmul.f32 %v1243_v18, %v1237_v17  ;;  %v1241_v23 = vpop.permute.xlu0 %1240  ;;  %v317_v18 = vadd.f32 %v3040_v11, %v3664_v19 }
 0xfe1   :  { %v1246_v25 = vmul.f32 %v1241_v23, %v1236_v20  ;;  %v312_v20 = vadd.f32 %v3664_v19, %v311_v12 }
 0xfe2   :  { %v1251_v26 = vadd.f32 %v1249_v21, %v1247_v22 }
 0xfe3   :  { %v1250_v27 = vadd.f32 %v1248_v24, %v1246_v25 }
 0xfe4   :  { %1259 = vrot.lane.b32.xlu1 %v1251_v26, %s3548_s12 }
 0xfe5   :  { %1257 = vrot.lane.b32.xlu0 %v1250_v27, %s3548_s12 }
0x1056   :  { %v1260_v29 = vpop.permute.xlu1 %1259 }
0x1057   :  { %v1258_v28 = vpop.permute.xlu0 %1257 }
0x1058   :  { %3139 = vmatprep.mubr.msk.f32.mxu1 %vm445_vm1, %v1258_v28 }
0x1059   :  { %3140 = vmatmul.mubr.msk.f32.vlgmr.msra.gmra.mrb[12].mxu1 %vm445_vm1, %v1260_v29 }
0x105a   :  { %3326 = vmatpush3.bf16.msra.mxu1 %v3616_v4 }
0x105b   :  { %3328 = vmatprep.subr.bf16.mxu1 %v3627_v9 }
0x105e   :  { %3330 = vmatpush3.bf16.msra.mxu1 %v3627_v9 }
0x105f   :  { %3340 = vmatprep.subr.bf16.mxu1 %v3616_v4 }
0x112c   :  { %v3141_v32 = vpop.f32.mrb[12].mxu1 }
0x112d   :  { %v1337_v33 = vadd.f32 %v3141_v32, %v3655_v14  ;;  %v1331_v34 = vpop.f32.mrb[13].mxu1 }
0x112e   :  { %v1332_v35 = vadd.f32 %v3655_v14, %v1331_v34 }
0x112f   :  { %1354 = vrot.lane.b32.xlu1 %v1337_v33, %s3547_s29  ;;  %v1341_v38 = vadd.f32 %v1337_v33, %v307_v36 }
0x1130   :  { %1352 = vrot.lane.b32.xlu0 %v1332_v35, %s3547_s29  ;;  %v1340_v39 = vadd.f32 %v1332_v35, %v302_v37 }
0x1131   :  { %v1343_v40 = vmul.f32 0.5, %v1341_v38  ;;  %v54_v38 = vld [vmem:[%s4176_s0 + $0x88] sm:$0xff] }
0x1132   :  { %v1342_v41 = vmul.f32 0.5, %v1340_v39  ;;  %v55_v39 = vld [vmem:[%s4176_s0 + $0x90] sm:$0xff] }
0x1133   :  { %3460 = vtanh.f32 %v1343_v40  ;;  %v56_v40 = vld [vmem:[%s4176_s0 + $0x98] sm:$0xff] }
0x1134   :  { %3462 = vtanh.f32 %v1342_v41  ;;  %v57_v41 = vld [vmem:[%s4176_s0 + $0xa0] sm:$0xff] }
0x113d   :  { %v3461_v42 = vpop.eup %3460 }
0x113e   :  { %v3463_v43 = vpop.eup %3462  ;;  %v1347_v44 = vadd.f32 1.0, %v3461_v42 }
0x113f   :  { %v1346_v45 = vadd.f32 1.0, %v3463_v43  ;;  %v58_v43 = vld [vmem:[%s4176_s0 + $0xa8] sm:$0xff] }
0x1140   :  { %v1349_v46 = vmul.f32 0.5, %v1347_v44 }
0x1141   :  { %v1348_v48 = vmul.f32 0.5, %v1346_v45  ;;  %v59_v45 = vld [vmem:[%s4176_s0 + $0xb0] sm:$0xff] }
0x1142   :  { %v1373_v60 = vsub.f32 1.0, %v1349_v46  ;;  %v1385_v63 = vmul.f32 %v1349_v46, %v1251_v26 }
0x1143   :  { %v1372_v62 = vsub.f32 1.0, %v1348_v48  ;;  %v1384_v2 = vmul.f32 %v1348_v48, %v1250_v27 }
0x11a1   :  { %v1355_v47 = vpop.permute.xlu1 %1354 }
0x11a2   :  { %v1359_v49 = vmul.f32 %v1355_v47, %v1349_v46  ;;  %v1353_v50 = vpop.permute.xlu0 %1352  ;;  %v60_v46 = vld [vmem:[%s4176_s0 + $0xb8] sm:$0xff]  ;;  %v61_v47 = vld [vmem:[%s4176_s0 + $0xc0] sm:$0xff] }
0x11a3   :  { %v1358_v51 = vmul.f32 %v1353_v50, %v1348_v48  ;;  %v62_v48 = vld [vmem:[%s4176_s0 + $0xc8] sm:$0xff]  ;;  %v64_v50 = vld [vmem:[%s4176_s0 + $0xd8] sm:$0xff] }
0x11a4   :  { %1364 = vrot.lane.b32.xlu1 %v1359_v49, %s3547_s29  ;;  %v63_v49 = vld [vmem:[%s4176_s0 + $0xd0] sm:$0xff] }
0x11a5   :  { %1362 = vrot.lane.b32.xlu0 %v1358_v51, %s3547_s29  ;;  %v65_v51 = vld [vmem:[%s4176_s0 + $0xe0] sm:$0xff] }
0x1216   :  { %v1365_v52 = vpop.permute.xlu1 %1364 }
0x1217   :  { %v1369_v53 = vadd.f32 %v1365_v52, %v307_v36  ;;  %v1363_v54 = vpop.permute.xlu0 %1362  ;;  %v66_v52 = vld [vmem:[%s4176_s0 + $0xe8] sm:$0xff] }
0x1218   :  { %v1368_v55 = vadd.f32 %v1363_v54, %v302_v37  ;;  %v53_v37 = vld [vmem:[%s4176_s0 + $0x80] sm:$0xff]  ;;  %v68_v54 = vld [vmem:[%s4176_s0 + $0xf8] sm:$0xff] }
0x1219   :  { %3464 = vtanh.f32 %v1369_v53  ;;  %3041 = vmatprep.mubr.msk.f32.mxu0 %vm78_vm0, %v53_v37  ;;  %v67_v53 = vld [vmem:[%s4176_s0 + $0xf0] sm:$0xff] }
0x121a   :  { %3466 = vtanh.f32 %v1368_v55  ;;  %3042 = vmatmul.mubr.msk.f32.gmra.mrb[16].mxu0 %vm78_vm0, %v54_v38 }
0x121b   :  { %3044 = vmatprep.mubr.msk.f32.mxu0 %vm78_vm0, %v55_v39 }
0x121e   :  { %3045 = vmatmul.mubr.msk.f32.gmra.mrb[18].mxu0 %vm78_vm0, %v56_v40 }
0x121f   :  { %3047 = vmatprep.mubr.msk.f32.mxu0 %vm78_vm0, %v57_v41 }
0x1222   :  { %3048 = vmatmul.mubr.msk.f32.gmra.mrb[20].mxu0 %vm78_vm0, %v58_v43 }
0x1223   :  { %v3465_v56 = vpop.eup %3464  ;;  %3050 = vmatprep.mubr.msk.f32.mxu0 %vm78_vm0, %v59_v45 }
0x1224   :  { %v3467_v57 = vpop.eup %3466  ;;  %1378 = vrot.lane.b32.xlu1 %v3465_v56, %s3548_s12 }
0x1225   :  { %1376 = vrot.lane.b32.xlu0 %v3467_v57, %s3548_s12 }
0x1226   :  { %3051 = vmatmul.mubr.msk.f32.gmra.mrb[22].mxu0 %vm78_vm0, %v60_v46 }
0x1227   :  { %3053 = vmatprep.mubr.msk.f32.mxu0 %vm78_vm0, %v61_v47 }
0x122a   :  { %3054 = vmatmul.mubr.msk.f32.gmra.mrb[24].mxu0 %vm78_vm0, %v62_v48 }
0x122b   :  { %3056 = vmatprep.mubr.msk.f32.mxu0 %vm78_vm0, %v63_v49 }
0x122e   :  { %3057 = vmatmul.mubr.msk.f32.gmra.mrb[26].mxu0 %vm78_vm0, %v64_v50 }
0x122f   :  { %3059 = vmatprep.mubr.msk.f32.mxu0 %vm78_vm0, %v65_v51 }
0x1232   :  { %3060 = vmatmul.mubr.msk.f32.gmra.mrb[28].mxu0 %vm78_vm0, %v66_v52 }
0x1233   :  { %3062 = vmatprep.mubr.msk.f32.mxu0 %vm78_vm0, %v67_v53 }
0x1236   :  { %3063 = vmatmul.mubr.msk.f32.gmra.mrb[30].mxu0 %vm78_vm0, %v68_v54 }
0x1296   :  { %v1379_v61 = vpop.permute.xlu1 %1378 }
0x1297   :  { %v1383_v0 = vmul.f32 %v1379_v61, %v1373_v60  ;;  %v1377_v1 = vpop.permute.xlu0 %1376 }
0x1298   :  { %v1382_v5 = vmul.f32 %v1377_v1, %v1372_v62 }
0x1299   :  { %v3840_v6 = vadd.f32 %v1385_v63, %v1383_v0 }
0x129a   :  { %v3842_v7 = vadd.f32 %v1384_v2, %v1382_v5 }
0x129b   :  { %1395 = vrot.lane.b32.xlu1 %v3840_v6, %s3548_s12 }
0x129c   :  { %1393 = vrot.lane.b32.xlu0 %v3842_v7, %s3548_s12 }
0x12ed   :  { %v3043_v1 = vpop.f32.mrb[16].mxu0 }
0x12ee   :  { %v321_v2 = vpop.f32.mrb[17].mxu0 }
0x12f1   :  { %v3938_v5 = vpop.f32.mrb[18].mxu0 }
0x130d   :  { %v1396_v10 = vpop.permute.xlu1 %1395 }
0x130e   :  { %v1394_v8 = vpop.permute.xlu0 %1393 }
0x130f   :  { %3150 = vmatprep.mubr.msk.f32.mxu1 %vm445_vm1, %v1394_v8 }
0x1310   :  { %3151 = vmatmul.mubr.msk.f32.vlgmr.msra.gmra.mrb[14].mxu1 %vm445_vm1, %v1396_v10 }
0x1311   :  { %3342 = vmatpush3.bf16.msra.mxu1 %v3616_v4 }
0x1312   :  { %3344 = vmatprep.subr.bf16.mxu1 %v3627_v9 }
0x1315   :  { %3346 = vmatpush3.bf16.msra.mxu1 %v3627_v9 }
0x1316   :  { %3356 = vmatprep.subr.bf16.mxu1 %v3616_v4 }
0x13e3   :  { %v3152_v13 = vpop.f32.mrb[14].mxu1 }
0x13e4   :  { %v1473_v15 = vadd.f32 %v3152_v13, %v3655_v14  ;;  %v1467_v16 = vpop.f32.mrb[15].mxu1 }
0x13e5   :  { %v1468_v17 = vadd.f32 %v3655_v14, %v1467_v16 }
0x13e6   :  { %1490 = vrot.lane.b32.xlu1 %v1473_v15, %s3547_s29  ;;  %v1477_v21 = vadd.f32 %v1473_v15, %v317_v18 }
0x13e7   :  { %1488 = vrot.lane.b32.xlu0 %v1468_v17, %s3547_s29  ;;  %v1476_v22 = vadd.f32 %v1468_v17, %v312_v20 }
0x13e8   :  { %v1479_v23 = vmul.f32 0.5, %v1477_v21 }
0x13e9   :  { %v1478_v24 = vmul.f32 0.5, %v1476_v22 }
0x13ea   :  { %3468 = vtanh.f32 %v1479_v23 }
0x13eb   :  { %3470 = vtanh.f32 %v1478_v24 }
0x13f4   :  { %v3469_v25 = vpop.eup %3468 }
0x13f5   :  { %v3471_v26 = vpop.eup %3470  ;;  %v1483_v27 = vadd.f32 1.0, %v3469_v25  ;;  %v3975_v25 = vld [vmem:[%s4177_s4] ss:$0 sm:$0xff] }
0x13f6   :  { %v1482_v28 = vadd.f32 1.0, %v3471_v26 }
0x13f7   :  { %v1485_v29 = vmul.f32 0.5, %v1483_v27 }
0x13f8   :  { %v1484_v30 = vmul.f32 0.5, %v1482_v28 }
0x13f9   :  { %v1509_v55 = vsub.f32 1.0, %v1485_v29  ;;  %v1521_v58 = vmul.f32 %v1485_v29, %v3840_v6  ;;  %v3940_v6 = vpop.f32.mrb[19].mxu0 }
0x13fa   :  { %v1508_v57 = vsub.f32 1.0, %v1484_v30  ;;  %v1520_v61 = vmul.f32 %v1484_v30, %v3842_v7  ;;  %v3942_v8 = vpop.f32.mrb[20].mxu0 }
0x13fb   :  { %v3944_v7 = vpop.f32.mrb[21].mxu0 }
0x13fc   :  { %v3946_v10 = vpop.f32.mrb[22].mxu0 }
0x13fd   :  { %v3948_v11 = vpop.f32.mrb[23].mxu0 }
0x13fe   :  { %v3950_v12 = vpop.f32.mrb[24].mxu0 }
0x13ff   :  { %v3952_v13 = vpop.f32.mrb[25].mxu0 }
0x1400   :  { %v3954_v15 = vpop.f32.mrb[26].mxu0 }
0x1401   :  { %v3956_v16 = vpop.f32.mrb[27].mxu0 }
0x1402   :  { %v3958_v17 = vpop.f32.mrb[28].mxu0 }
0x1458   :  { %v1491_v14 = vpop.permute.xlu1 %1490 }
0x1459   :  { %v1495_v31 = vmul.f32 %v1491_v14, %v1485_v29  ;;  %v1489_v32 = vpop.permute.xlu0 %1488  ;;  %v3984_v29 = vld [vmem:[%s4178_s3] ss:$0 sm:$0xff] }
0x145a   :  { %v1494_v33 = vmul.f32 %v1489_v32, %v1484_v30  ;;  %v327_v14 = vadd.f32 %v3984_v29, %v3043_v1  ;;  %v322_v30 = vadd.f32 %v3984_v29, %v321_v2  ;;  %v337_v2 = vadd.f32 %v3984_v29, %v3938_v5 }
0x145b   :  { %1500 = vrot.lane.b32.xlu1 %v1495_v31, %s3547_s29 }
0x145c   :  { %1498 = vrot.lane.b32.xlu0 %v1494_v33, %s3547_s29 }
0x14cd   :  { %v1501_v19 = vpop.permute.xlu1 %1500 }
0x14ce   :  { %v1505_v34 = vadd.f32 %v1501_v19, %v317_v18  ;;  %v1499_v35 = vpop.permute.xlu0 %1498  ;;  %v3960_v18 = vpop.f32.mrb[29].mxu0 }
0x14cf   :  { %v1504_v36 = vadd.f32 %v1499_v35, %v312_v20  ;;  %v3962_v20 = vpop.f32.mrb[30].mxu0 }
0x14d0   :  { %3472 = vtanh.f32 %v1505_v34  ;;  %v3964_v22 = vpop.f32.mrb[31].mxu0 }
0x14d1   :  { %3474 = vtanh.f32 %v1504_v36 }
0x14da   :  { %v3473_v42 = vpop.eup %3472 }
0x14db   :  { %v3475_v44 = vpop.eup %3474  ;;  %1514 = vrot.lane.b32.xlu1 %v3473_v42, %s3548_s12 }
0x14dc   :  { %1512 = vrot.lane.b32.xlu0 %v3475_v44, %s3548_s12 }
0x154d   :  { %v1515_v56 = vpop.permute.xlu1 %1514 }
0x154e   :  { %v1519_v59 = vmul.f32 %v1515_v56, %v1509_v55  ;;  %v1513_v60 = vpop.permute.xlu0 %1512 }
0x154f   :  { %v1518_v62 = vmul.f32 %v1513_v60, %v1508_v57 }
0x1550   :  { %v3930_v63 = vadd.f32 %v1521_v58, %v1519_v59 }
0x1551   :  { %v3932_v0 = vadd.f32 %v1520_v61, %v1518_v62 }
0x1552   :  { %1531 = vrot.lane.b32.xlu1 %v3930_v63, %s3548_s12 }
0x1553   :  { %1529 = vrot.lane.b32.xlu0 %v3932_v0, %s3548_s12 }
0x15c4   :  { %v1532_v23 = vpop.permute.xlu1 %1531 }
0x15c5   :  { %v1530_v21 = vpop.permute.xlu0 %1529 }
0x15c6   :  { %3161 = vmatprep.mubr.msk.f32.mxu0 %vm445_vm1, %v1530_v21  ;;  %v332_v21 = vadd.f32 %v3984_v29, %v3940_v6 }
0x15c7   :  { %3162 = vmatmul.mubr.msk.f32.vlgmr.msra.gmra.mrb[32].mxu0 %vm445_vm1, %v1532_v23 }
0x15c8   :  { %3350 = vmatpush3.bf16.msra.mxu0 %v3616_v4 }
0x15c9   :  { %3352 = vmatprep.subr.bf16.mxu0 %v3627_v9 }
0x15cc   :  { %3354 = vmatpush3.bf16.msra.mxu0 %v3627_v9 }
0x15cd   :  { %3364 = vmatprep.subr.bf16.mxu0 %v3616_v4 }
0x169a   :  { %v3163_v24 = vpop.f32.mrb[32].mxu0 }
0x169b   :  { %v1609_v26 = vadd.f32 %v3975_v25, %v3163_v24  ;;  %v1603_v27 = vpop.f32.mrb[33].mxu0 }
0x169c   :  { %v1604_v28 = vadd.f32 %v3975_v25, %v1603_v27 }
0x169d   :  { %1626 = vrot.lane.b32.xlu1 %v1609_v26, %s3547_s29  ;;  %v1613_v31 = vadd.f32 %v1609_v26, %v327_v14 }
0x169e   :  { %1624 = vrot.lane.b32.xlu0 %v1604_v28, %s3547_s29  ;;  %v1612_v32 = vadd.f32 %v1604_v28, %v322_v30 }
0x169f   :  { %v1615_v33 = vmul.f32 0.5, %v1613_v31 }
0x16a0   :  { %v1614_v19 = vmul.f32 0.5, %v1612_v32 }
0x16a1   :  { %3476 = vtanh.f32 %v1615_v33 }
0x16a2   :  { %3478 = vtanh.f32 %v1614_v19 }
0x16ab   :  { %v3477_v34 = vpop.eup %3476 }
0x16ac   :  { %v3479_v35 = vpop.eup %3478  ;;  %v1619_v36 = vadd.f32 1.0, %v3477_v34 }
0x16ad   :  { %v1618_v37 = vadd.f32 1.0, %v3479_v35 }
0x16ae   :  { %v1621_v38 = vmul.f32 0.5, %v1619_v36 }
0x16af   :  { %v1620_v40 = vmul.f32 0.5, %v1618_v37 }
0x16b0   :  { %v1645_v50 = vsub.f32 1.0, %v1621_v38  ;;  %v1657_v53 = vmul.f32 %v1621_v38, %v3930_v63 }
0x16b1   :  { %v1644_v52 = vsub.f32 1.0, %v1620_v40  ;;  %v1656_v56 = vmul.f32 %v1620_v40, %v3932_v0 }
0x170f   :  { %v1627_v39 = vpop.permute.xlu1 %1626 }
0x1710   :  { %v1631_v41 = vmul.f32 %v1627_v39, %v1621_v38  ;;  %v1625_v42 = vpop.permute.xlu0 %1624 }
0x1711   :  { %v1630_v43 = vmul.f32 %v1625_v42, %v1620_v40 }
0x1712   :  { %1636 = vrot.lane.b32.xlu1 %v1631_v41, %s3547_s29 }
0x1713   :  { %1634 = vrot.lane.b32.xlu0 %v1630_v43, %s3547_s29 }
0x1784   :  { %v1637_v44 = vpop.permute.xlu1 %1636 }
0x1785   :  { %v1641_v45 = vadd.f32 %v1637_v44, %v327_v14  ;;  %v1635_v46 = vpop.permute.xlu0 %1634 }
0x1786   :  { %v1640_v47 = vadd.f32 %v1635_v46, %v322_v30 }
0x1787   :  { %3480 = vtanh.f32 %v1641_v45 }
0x1788   :  { %3482 = vtanh.f32 %v1640_v47 }
0x1791   :  { %v3481_v48 = vpop.eup %3480 }
0x1792   :  { %v3483_v49 = vpop.eup %3482  ;;  %1650 = vrot.lane.b32.xlu1 %v3481_v48, %s3548_s12 }
0x1793   :  { %1648 = vrot.lane.b32.xlu0 %v3483_v49, %s3548_s12 }
0x1804   :  { %v1651_v51 = vpop.permute.xlu1 %1650 }
0x1805   :  { %v1655_v54 = vmul.f32 %v1651_v51, %v1645_v50  ;;  %v1649_v55 = vpop.permute.xlu0 %1648 }
0x1806   :  { %v1654_v57 = vmul.f32 %v1649_v55, %v1644_v52 }
0x1807   :  { %v1659_v58 = vadd.f32 %v1657_v53, %v1655_v54 }
0x1808   :  { %v1658_v59 = vadd.f32 %v1656_v56, %v1654_v57  ;;  %v347_v57 = vadd.f32 %v3984_v29, %v3942_v8 }
0x1809   :  { %1667 = vrot.lane.b32.xlu1 %v1659_v58, %s3548_s12 }
0x180a   :  { %1665 = vrot.lane.b32.xlu0 %v1658_v59, %s3548_s12 }
0x187b   :  { %v1668_v61 = vpop.permute.xlu1 %1667 }
0x187c   :  { %v1666_v60 = vpop.permute.xlu0 %1665 }
0x187d   :  { %3172 = vmatprep.mubr.msk.f32.mxu1 %vm445_vm1, %v1666_v60 }
0x187e   :  { %3173 = vmatmul.mubr.msk.f32.vlgmr.msra.gmra.mrb[16].mxu1 %vm445_vm1, %v1668_v61 }
0x187f   :  { %3358 = vmatpush3.bf16.msra.mxu1 %v3616_v4 }
0x1880   :  { %3360 = vmatprep.subr.bf16.mxu1 %v3627_v9 }
0x1883   :  { %3362 = vmatpush3.bf16.msra.mxu1 %v3627_v9 }
0x1884   :  { %3372 = vmatprep.subr.bf16.mxu1 %v3616_v4 }
0x1951   :  { %v3174_v62 = vpop.f32.mrb[16].mxu1 }
0x1952   :  { %v1745_v63 = vadd.f32 %v3975_v25, %v3174_v62  ;;  %v1739_v0 = vpop.f32.mrb[17].mxu1 }
0x1953   :  { %v1740_v1 = vadd.f32 %v3975_v25, %v1739_v0 }
0x1954   :  { %1762 = vrot.lane.b32.xlu1 %v1745_v63, %s3547_s29  ;;  %v1749_v23 = vadd.f32 %v1745_v63, %v337_v2 }
0x1955   :  { %1760 = vrot.lane.b32.xlu0 %v1740_v1, %s3547_s29  ;;  %v1748_v24 = vadd.f32 %v1740_v1, %v332_v21 }
0x1956   :  { %v1751_v26 = vmul.f32 0.5, %v1749_v23 }
0x1957   :  { %v1750_v27 = vmul.f32 0.5, %v1748_v24 }
0x1958   :  { %3484 = vtanh.f32 %v1751_v26 }
0x1959   :  { %3486 = vtanh.f32 %v1750_v27 }
0x1962   :  { %v3485_v28 = vpop.eup %3484 }
0x1963   :  { %v3487_v14 = vpop.eup %3486  ;;  %v1755_v30 = vadd.f32 1.0, %v3485_v28 }
0x1964   :  { %v1754_v31 = vadd.f32 1.0, %v3487_v14 }
0x1965   :  { %v1757_v32 = vmul.f32 0.5, %v1755_v30 }
0x1966   :  { %v1756_v19 = vmul.f32 0.5, %v1754_v31 }
0x1967   :  { %v1781_v41 = vsub.f32 1.0, %v1757_v32  ;;  %v1793_v44 = vmul.f32 %v1757_v32, %v1659_v58  ;;  %v342_v58 = vadd.f32 %v3984_v29, %v3944_v7 }
0x1968   :  { %v1780_v43 = vsub.f32 1.0, %v1756_v19  ;;  %v1792_v47 = vmul.f32 %v1756_v19, %v1658_v59 }
0x19c6   :  { %v1763_v33 = vpop.permute.xlu1 %1762 }
0x19c7   :  { %v1767_v34 = vmul.f32 %v1763_v33, %v1757_v32  ;;  %v1761_v35 = vpop.permute.xlu0 %1760 }
0x19c8   :  { %v1766_v36 = vmul.f32 %v1761_v35, %v1756_v19 }
0x19c9   :  { %1772 = vrot.lane.b32.xlu1 %v1767_v34, %s3547_s29 }
0x19ca   :  { %1770 = vrot.lane.b32.xlu0 %v1766_v36, %s3547_s29 }
0x1a3b   :  { %v1773_v5 = vpop.permute.xlu1 %1772 }
0x1a3c   :  { %v1777_v6 = vadd.f32 %v1773_v5, %v337_v2  ;;  %v1771_v37 = vpop.permute.xlu0 %1770 }
0x1a3d   :  { %v1776_v38 = vadd.f32 %v1771_v37, %v332_v21 }
0x1a3e   :  { %3488 = vtanh.f32 %v1777_v6 }
0x1a3f   :  { %3490 = vtanh.f32 %v1776_v38 }
0x1a48   :  { %v3489_v39 = vpop.eup %3488 }
0x1a49   :  { %v3491_v40 = vpop.eup %3490  ;;  %1786 = vrot.lane.b32.xlu1 %v3489_v39, %s3548_s12 }
0x1a4a   :  { %1784 = vrot.lane.b32.xlu0 %v3491_v40, %s3548_s12 }
0x1abb   :  { %v1787_v42 = vpop.permute.xlu1 %1786 }
0x1abc   :  { %v1791_v45 = vmul.f32 %v1787_v42, %v1781_v41  ;;  %v1785_v46 = vpop.permute.xlu0 %1784 }
0x1abd   :  { %v1790_v48 = vmul.f32 %v1785_v46, %v1780_v43  ;;  %v357_v46 = vadd.f32 %v3984_v29, %v3946_v10 }
0x1abe   :  { %v1795_v49 = vadd.f32 %v1793_v44, %v1791_v45 }
0x1abf   :  { %v1794_v50 = vadd.f32 %v1792_v47, %v1790_v48  ;;  %v352_v47 = vadd.f32 %v3984_v29, %v3948_v11 }
0x1ac0   :  { %1803 = vrot.lane.b32.xlu1 %v1795_v49, %s3548_s12 }
0x1ac1   :  { %1801 = vrot.lane.b32.xlu0 %v1794_v50, %s3548_s12 }
0x1b32   :  { %v1804_v52 = vpop.permute.xlu1 %1803 }
0x1b33   :  { %v1802_v51 = vpop.permute.xlu0 %1801 }
0x1b34   :  { %3183 = vmatprep.mubr.msk.f32.mxu0 %vm445_vm1, %v1802_v51 }
0x1b35   :  { %3184 = vmatmul.mubr.msk.f32.vlgmr.msra.gmra.mrb[34].mxu0 %vm445_vm1, %v1804_v52 }
0x1b36   :  { %3366 = vmatpush3.bf16.msra.mxu0 %v3616_v4 }
0x1b37   :  { %3368 = vmatprep.subr.bf16.mxu0 %v3627_v9 }
0x1b3a   :  { %3370 = vmatpush3.bf16.msra.mxu0 %v3627_v9 }
0x1b3b   :  { %3380 = vmatprep.subr.bf16.mxu0 %v3616_v4 }
0x1c08   :  { %v3185_v53 = vpop.f32.mrb[34].mxu0 }
0x1c09   :  { %v1881_v54 = vadd.f32 %v3975_v25, %v3185_v53  ;;  %v1875_v55 = vpop.f32.mrb[35].mxu0 }
0x1c0a   :  { %v1876_v56 = vadd.f32 %v3975_v25, %v1875_v55 }
0x1c0b   :  { %1898 = vrot.lane.b32.xlu1 %v1881_v54, %s3547_s29  ;;  %v1885_v59 = vadd.f32 %v1881_v54, %v347_v57 }
0x1c0c   :  { %1896 = vrot.lane.b32.xlu0 %v1876_v56, %s3547_s29  ;;  %v1884_v60 = vadd.f32 %v1876_v56, %v342_v58 }
0x1c0d   :  { %v1887_v61 = vmul.f32 0.5, %v1885_v59 }
0x1c0e   :  { %v1886_v62 = vmul.f32 0.5, %v1884_v60 }
0x1c0f   :  { %3492 = vtanh.f32 %v1887_v61 }
0x1c10   :  { %3494 = vtanh.f32 %v1886_v62 }
0x1c19   :  { %v3493_v63 = vpop.eup %3492 }
0x1c1a   :  { %v3495_v0 = vpop.eup %3494  ;;  %v1891_v1 = vadd.f32 1.0, %v3493_v63 }
0x1c1b   :  { %v1890_v2 = vadd.f32 1.0, %v3495_v0 }
0x1c1c   :  { %v1893_v21 = vmul.f32 0.5, %v1891_v1 }
0x1c1d   :  { %v1892_v24 = vmul.f32 0.5, %v1890_v2 }
0x1c1e   :  { %v1917_v33 = vsub.f32 1.0, %v1893_v21  ;;  %v1929_v35 = vmul.f32 %v1893_v21, %v1795_v49 }
0x1c1f   :  { %v1916_v34 = vsub.f32 1.0, %v1892_v24  ;;  %v1928_v6 = vmul.f32 %v1892_v24, %v1794_v50 }
0x1c7d   :  { %v1899_v23 = vpop.permute.xlu1 %1898 }
0x1c7e   :  { %v1903_v26 = vmul.f32 %v1899_v23, %v1893_v21  ;;  %v1897_v27 = vpop.permute.xlu0 %1896 }
0x1c7f   :  { %v1902_v28 = vmul.f32 %v1897_v27, %v1892_v24 }
0x1c80   :  { %1908 = vrot.lane.b32.xlu1 %v1903_v26, %s3547_s29 }
0x1c81   :  { %1906 = vrot.lane.b32.xlu0 %v1902_v28, %s3547_s29 }
0x1cf2   :  { %v1909_v8 = vpop.permute.xlu1 %1908 }
0x1cf3   :  { %v1913_v7 = vadd.f32 %v1909_v8, %v347_v57  ;;  %v1907_v14 = vpop.permute.xlu0 %1906 }
0x1cf4   :  { %v1912_v30 = vadd.f32 %v1907_v14, %v342_v58 }
0x1cf5   :  { %3496 = vtanh.f32 %v1913_v7 }
0x1cf6   :  { %3498 = vtanh.f32 %v1912_v30 }
0x1cff   :  { %v3497_v31 = vpop.eup %3496 }
0x1d00   :  { %v3499_v32 = vpop.eup %3498  ;;  %1922 = vrot.lane.b32.xlu1 %v3497_v31, %s3548_s12 }
0x1d01   :  { %1920 = vrot.lane.b32.xlu0 %v3499_v32, %s3548_s12 }
0x1d72   :  { %v1923_v19 = vpop.permute.xlu1 %1922 }
0x1d73   :  { %v1927_v36 = vmul.f32 %v1923_v19, %v1917_v33  ;;  %v1921_v5 = vpop.permute.xlu0 %1920 }
0x1d74   :  { %v1926_v37 = vmul.f32 %v1921_v5, %v1916_v34 }
0x1d75   :  { %v1931_v38 = vadd.f32 %v1929_v35, %v1927_v36  ;;  %v367_v35 = vadd.f32 %v3984_v29, %v3950_v12  ;;  %v362_v36 = vadd.f32 %v3984_v29, %v3952_v13 }
0x1d76   :  { %v1930_v39 = vadd.f32 %v1928_v6, %v1926_v37 }
0x1d77   :  { %1939 = vrot.lane.b32.xlu1 %v1931_v38, %s3548_s12 }
0x1d78   :  { %1937 = vrot.lane.b32.xlu0 %v1930_v39, %s3548_s12 }
0x1de9   :  { %v1940_v41 = vpop.permute.xlu1 %1939 }
0x1dea   :  { %v1938_v40 = vpop.permute.xlu0 %1937 }
0x1deb   :  { %3194 = vmatprep.mubr.msk.f32.mxu1 %vm445_vm1, %v1938_v40 }
0x1dec   :  { %3195 = vmatmul.mubr.msk.f32.vlgmr.msra.gmra.mrb[18].mxu1 %vm445_vm1, %v1940_v41 }
0x1ded   :  { %3374 = vmatpush3.bf16.msra.mxu1 %v3616_v4 }
0x1dee   :  { %3376 = vmatprep.subr.bf16.mxu1 %v3627_v9 }
0x1df1   :  { %3378 = vmatpush3.bf16.msra.mxu1 %v3627_v9 }
0x1df2   :  { %3388 = vmatprep.subr.bf16.mxu1 %v3616_v4 }
0x1ebf   :  { %v3196_v42 = vpop.f32.mrb[18].mxu1 }
0x1ec0   :  { %v2017_v43 = vadd.f32 %v3975_v25, %v3196_v42  ;;  %v2011_v44 = vpop.f32.mrb[19].mxu1 }
0x1ec1   :  { %v2012_v45 = vadd.f32 %v3975_v25, %v2011_v44 }
0x1ec2   :  { %2034 = vrot.lane.b32.xlu1 %v2017_v43, %s3547_s29  ;;  %v2021_v48 = vadd.f32 %v2017_v43, %v357_v46 }
0x1ec3   :  { %2032 = vrot.lane.b32.xlu0 %v2012_v45, %s3547_s29  ;;  %v2020_v49 = vadd.f32 %v2012_v45, %v352_v47 }
0x1ec4   :  { %v2023_v50 = vmul.f32 0.5, %v2021_v48 }
0x1ec5   :  { %v2022_v51 = vmul.f32 0.5, %v2020_v49 }
0x1ec6   :  { %3500 = vtanh.f32 %v2023_v50 }
0x1ec7   :  { %3502 = vtanh.f32 %v2022_v51 }
0x1ed0   :  { %v3501_v52 = vpop.eup %3500 }
0x1ed1   :  { %v3503_v53 = vpop.eup %3502  ;;  %v2027_v54 = vadd.f32 1.0, %v3501_v52 }
0x1ed2   :  { %v2026_v55 = vadd.f32 1.0, %v3503_v53 }
0x1ed3   :  { %v2029_v56 = vmul.f32 0.5, %v2027_v54 }
0x1ed4   :  { %v2028_v58 = vmul.f32 0.5, %v2026_v55 }
0x1ed5   :  { %v2053_v2 = vsub.f32 1.0, %v2029_v56  ;;  %v2065_v24 = vmul.f32 %v2029_v56, %v1931_v38 }
0x1ed6   :  { %v2052_v23 = vsub.f32 1.0, %v2028_v58  ;;  %v2064_v28 = vmul.f32 %v2028_v58, %v1930_v39 }
0x1f34   :  { %v2035_v57 = vpop.permute.xlu1 %2034 }
0x1f35   :  { %v2039_v59 = vmul.f32 %v2035_v57, %v2029_v56  ;;  %v2033_v60 = vpop.permute.xlu0 %2032 }
0x1f36   :  { %v2038_v61 = vmul.f32 %v2033_v60, %v2028_v58 }
0x1f37   :  { %2044 = vrot.lane.b32.xlu1 %v2039_v59, %s3547_s29 }
0x1f38   :  { %2042 = vrot.lane.b32.xlu0 %v2038_v61, %s3547_s29 }
0x1fa9   :  { %v2045_v10 = vpop.permute.xlu1 %2044 }
0x1faa   :  { %v2049_v11 = vadd.f32 %v2045_v10, %v357_v46  ;;  %v2043_v62 = vpop.permute.xlu0 %2042 }
0x1fab   :  { %v2048_v63 = vadd.f32 %v2043_v62, %v352_v47 }
0x1fac   :  { %3504 = vtanh.f32 %v2049_v11 }
0x1fad   :  { %3506 = vtanh.f32 %v2048_v63 }
0x1fb6   :  { %v3505_v0 = vpop.eup %3504 }
0x1fb7   :  { %v3507_v1 = vpop.eup %3506  ;;  %2058 = vrot.lane.b32.xlu1 %v3505_v0, %s3548_s12 }
0x1fb8   :  { %2056 = vrot.lane.b32.xlu0 %v3507_v1, %s3548_s12 }
0x2029   :  { %v2059_v21 = vpop.permute.xlu1 %2058 }
0x202a   :  { %v2063_v26 = vmul.f32 %v2059_v21, %v2053_v2  ;;  %v2057_v27 = vpop.permute.xlu0 %2056  ;;  %v377_v21 = vadd.f32 %v3984_v29, %v3954_v15 }
0x202b   :  { %v2062_v8 = vmul.f32 %v2057_v27, %v2052_v23 }
0x202c   :  { %v2067_v7 = vadd.f32 %v2065_v24, %v2063_v26 }
0x202d   :  { %v2066_v14 = vadd.f32 %v2064_v28, %v2062_v8 }
0x202e   :  { %2075 = vrot.lane.b32.xlu1 %v2067_v7, %s3548_s12 }
0x202f   :  { %2073 = vrot.lane.b32.xlu0 %v2066_v14, %s3548_s12 }
0x20a0   :  { %v2076_v31 = vpop.permute.xlu1 %2075 }
0x20a1   :  { %v2074_v30 = vpop.permute.xlu0 %2073 }
0x20a2   :  { %3205 = vmatprep.mubr.msk.f32.mxu0 %vm445_vm1, %v2074_v30 }
0x20a3   :  { %3206 = vmatmul.mubr.msk.f32.vlgmr.msra.gmra.mrb[36].mxu0 %vm445_vm1, %v2076_v31 }
0x20a4   :  { %3382 = vmatpush3.bf16.msra.mxu0 %v3616_v4 }
0x20a5   :  { %3384 = vmatprep.subr.bf16.mxu0 %v3627_v9 }
0x20a8   :  { %3386 = vmatpush3.bf16.msra.mxu0 %v3627_v9 }
0x2176   :  { %v3207_v32 = vpop.f32.mrb[36].mxu0 }
0x2177   :  { %v2153_v33 = vadd.f32 %v3975_v25, %v3207_v32  ;;  %v2147_v19 = vpop.f32.mrb[37].mxu0 }
0x2178   :  { %v2148_v34 = vadd.f32 %v3975_v25, %v2147_v19 }
0x2179   :  { %2170 = vrot.lane.b32.xlu1 %v2153_v33, %s3547_s29  ;;  %v2157_v5 = vadd.f32 %v2153_v33, %v367_v35 }
0x217a   :  { %2168 = vrot.lane.b32.xlu0 %v2148_v34, %s3547_s29  ;;  %v2156_v6 = vadd.f32 %v2148_v34, %v362_v36 }
0x217b   :  { %v2159_v37 = vmul.f32 0.5, %v2157_v5 }
0x217c   :  { %v2158_v38 = vmul.f32 0.5, %v2156_v6 }
0x217d   :  { %3508 = vtanh.f32 %v2159_v37 }
0x217e   :  { %3510 = vtanh.f32 %v2158_v38 }
0x2187   :  { %v3509_v39 = vpop.eup %3508 }
0x2188   :  { %v3511_v40 = vpop.eup %3510  ;;  %v2163_v41 = vadd.f32 1.0, %v3509_v39 }
0x2189   :  { %v2162_v42 = vadd.f32 1.0, %v3511_v40 }
0x218a   :  { %v2165_v43 = vmul.f32 0.5, %v2163_v41 }
0x218b   :  { %v2164_v45 = vmul.f32 0.5, %v2162_v42 }
0x218c   :  { %v2189_v53 = vsub.f32 1.0, %v2165_v43  ;;  %v2201_v56 = vmul.f32 %v2165_v43, %v2067_v7 }
0x218d   :  { %v2188_v55 = vsub.f32 1.0, %v2164_v45  ;;  %v2200_v59 = vmul.f32 %v2164_v45, %v2066_v14 }
0x21eb   :  { %v2171_v44 = vpop.permute.xlu1 %2170 }
0x21ec   :  { %v2175_v46 = vmul.f32 %v2171_v44, %v2165_v43  ;;  %v2169_v47 = vpop.permute.xlu0 %2168 }
0x21ed   :  { %v2174_v48 = vmul.f32 %v2169_v47, %v2164_v45 }
0x21ee   :  { %2180 = vrot.lane.b32.xlu1 %v2175_v46, %s3547_s29 }
0x21ef   :  { %2178 = vrot.lane.b32.xlu0 %v2174_v48, %s3547_s29 }
0x2260   :  { %v2181_v12 = vpop.permute.xlu1 %2180 }
0x2261   :  { %v2185_v13 = vadd.f32 %v2181_v12, %v367_v35  ;;  %v2179_v49 = vpop.permute.xlu0 %2178 }
0x2262   :  { %v2184_v50 = vadd.f32 %v2179_v49, %v362_v36 }
0x2263   :  { %3512 = vtanh.f32 %v2185_v13 }
0x2264   :  { %3514 = vtanh.f32 %v2184_v50  ;;  %v387_v50 = vadd.f32 %v3984_v29, %v3958_v17 }
0x226d   :  { %v3513_v51 = vpop.eup %3512 }
0x226e   :  { %v3515_v52 = vpop.eup %3514  ;;  %2194 = vrot.lane.b32.xlu1 %v3513_v51, %s3548_s12  ;;  %v382_v51 = vadd.f32 %v3984_v29, %v3960_v18 }
0x226f   :  { %2192 = vrot.lane.b32.xlu0 %v3515_v52, %s3548_s12 }
0x22e0   :  { %v2195_v54 = vpop.permute.xlu1 %2194 }
0x22e1   :  { %v2199_v57 = vmul.f32 %v2195_v54, %v2189_v53  ;;  %v2193_v58 = vpop.permute.xlu0 %2192 }
0x22e2   :  { %v2198_v60 = vmul.f32 %v2193_v58, %v2188_v55 }
0x22e3   :  { %v2203_v61 = vadd.f32 %v2201_v56, %v2199_v57 }
0x22e4   :  { %v2202_v10 = vadd.f32 %v2200_v59, %v2198_v60 }
0x22e5   :  { %2211 = vrot.lane.b32.xlu1 %v2203_v61, %s3548_s12 }
0x22e6   :  { %2209 = vrot.lane.b32.xlu0 %v2202_v10, %s3548_s12 }
0x2357   :  { %v2212_v62 = vpop.permute.xlu1 %2211 }
0x2358   :  { %v2210_v11 = vpop.permute.xlu0 %2209 }
0x2359   :  { %3216 = vmatprep.mubr.msk.f32.mxu1 %vm445_vm1, %v2210_v11 }
0x235a   :  { %3217 = vmatmul.mubr.msk.f32.vlgmr.msra.gmra.mrb[20].mxu1 %vm445_vm1, %v2212_v62 }
0x235b   :  { %3390 = vmatpush3.bf16.msra.mxu1 %v3616_v4  ;;  %v372_v4 = vadd.f32 %v3984_v29, %v3956_v16 }
0x235c   :  { %3392 = vmatprep.subr.bf16.mxu1 %v3627_v9 }
0x235f   :  { %3394 = vmatpush3.bf16.msra.mxu1 %v3627_v9 }
0x242d   :  { %v3218_v63 = vpop.f32.mrb[20].mxu1 }
0x242e   :  { %v2289_v0 = vadd.f32 %v3975_v25, %v3218_v63  ;;  %v2283_v1 = vpop.f32.mrb[21].mxu1 }
0x242f   :  { %v2284_v2 = vadd.f32 %v3975_v25, %v2283_v1 }
0x2430   :  { %2306 = vrot.lane.b32.xlu1 %v2289_v0, %s3547_s29  ;;  %v2293_v23 = vadd.f32 %v2289_v0, %v377_v21 }
0x2431   :  { %2304 = vrot.lane.b32.xlu0 %v2284_v2, %s3547_s29  ;;  %v2292_v24 = vadd.f32 %v2284_v2, %v372_v4 }
0x2432   :  { %v2295_v26 = vmul.f32 0.5, %v2293_v23 }
0x2433   :  { %v2294_v9 = vmul.f32 0.5, %v2292_v24 }
0x2434   :  { %3516 = vtanh.f32 %v2295_v26 }
0x2435   :  { %3518 = vtanh.f32 %v2294_v9 }
0x243e   :  { %v3517_v27 = vpop.eup %3516 }
0x243f   :  { %v3519_v28 = vpop.eup %3518  ;;  %v2299_v8 = vadd.f32 1.0, %v3517_v27 }
0x2440   :  { %v2298_v7 = vadd.f32 1.0, %v3519_v28 }
0x2441   :  { %v2301_v14 = vmul.f32 0.5, %v2299_v8 }
0x2442   :  { %v2300_v31 = vmul.f32 0.5, %v2298_v7 }
0x2443   :  { %v2325_v6 = vsub.f32 1.0, %v2301_v14  ;;  %v2337_v39 = vmul.f32 %v2301_v14, %v2203_v61 }
0x2444   :  { %v2324_v38 = vsub.f32 1.0, %v2300_v31  ;;  %v2336_v42 = vmul.f32 %v2300_v31, %v2202_v10 }
0x24a2   :  { %v2307_v30 = vpop.permute.xlu1 %2306 }
0x24a3   :  { %v2311_v32 = vmul.f32 %v2307_v30, %v2301_v14  ;;  %v2305_v33 = vpop.permute.xlu0 %2304 }
0x24a4   :  { %v2310_v19 = vmul.f32 %v2305_v33, %v2300_v31 }
0x24a5   :  { %2316 = vrot.lane.b32.xlu1 %v2311_v32, %s3547_s29 }
0x24a6   :  { %2314 = vrot.lane.b32.xlu0 %v2310_v19, %s3547_s29 }
0x2517   :  { %v2317_v15 = vpop.permute.xlu1 %2316 }
0x2518   :  { %v2321_v16 = vadd.f32 %v2317_v15, %v377_v21  ;;  %v2315_v34 = vpop.permute.xlu0 %2314 }
0x2519   :  { %v2320_v35 = vadd.f32 %v2315_v34, %v372_v4  ;;  %v392_v34 = vadd.f32 %v3984_v29, %v3964_v22 }
0x251a   :  { %3520 = vtanh.f32 %v2321_v16  ;;  %v397_v16 = vadd.f32 %v3984_v29, %v3962_v20 }
0x251b   :  { %3522 = vtanh.f32 %v2320_v35 }
0x2524   :  { %v3521_v36 = vpop.eup %3520 }
0x2525   :  { %v3523_v5 = vpop.eup %3522  ;;  %2330 = vrot.lane.b32.xlu1 %v3521_v36, %s3548_s12 }
0x2526   :  { %2328 = vrot.lane.b32.xlu0 %v3523_v5, %s3548_s12 }
0x2597   :  { %v2331_v37 = vpop.permute.xlu1 %2330 }
0x2598   :  { %v2335_v40 = vmul.f32 %v2331_v37, %v2325_v6  ;;  %v2329_v41 = vpop.permute.xlu0 %2328 }
0x2599   :  { %v2334_v43 = vmul.f32 %v2329_v41, %v2324_v38 }
0x259a   :  { %v2339_v44 = vadd.f32 %v2337_v39, %v2335_v40 }
0x259b   :  { %v2338_v45 = vadd.f32 %v2336_v42, %v2334_v43 }
0x259c   :  { %2347 = vrot.lane.b32.xlu1 %v2339_v44, %s3548_s12 }
0x259d   :  { %2345 = vrot.lane.b32.xlu0 %v2338_v45, %s3548_s12 }
0x260e   :  { %v2348_v47 = vpop.permute.xlu1 %2347 }
0x260f   :  { %v2346_v46 = vpop.permute.xlu0 %2345 }
0x2610   :  { %3227 = vmatprep.mubr.msk.f32.mxu0 %vm445_vm1, %v2346_v46 }
0x2611   :  { %3228 = vmatmul.mubr.msk.f32.vlgmr.msra.gmra.mrb[38].mxu0 %vm445_vm1, %v2348_v47  ;;  %v3549_v47 = vmov 0.0|0.0  }
0x2612   :  { %3401 = vmatprep.subr.bf16.mxu1 %v3549_v47  ;;  %3395 = vmatprep.subr.bf16.mxu0 %v3549_v47 }
0x2613   :  { %3249 = vmatprep.mubr.msk.f32.mxu0 %vm3550_vm2, %v3546_v3 }
0x26e4   :  { %v3229_v48 = vpop.f32.mrb[38].mxu0 }
0x26e5   :  { %v2425_v12 = vadd.f32 %v3975_v25, %v3229_v48  ;;  %v2419_v13 = vpop.f32.mrb[39].mxu0  ;;  %v2612_v48 = vld [vmem:[%s4179_s5] sm:$0xff] }
0x26e6   :  { %v2420_v49 = vadd.f32 %v3975_v25, %v2419_v13  ;;  %v2616_v13 = vld [vmem:[%s4180_s6] sm:$0xff] }
0x26e7   :  { %2442 = vrot.lane.b32.xlu1 %v2425_v12, %s3547_s29  ;;  %v2429_v52 = vadd.f32 %v2425_v12, %v387_v50  ;;  %v2613_v12 = vld [vmem:[%s4179_s5 + $0x8] sm:$0xff] }
0x26e8   :  { %2440 = vrot.lane.b32.xlu0 %v2420_v49, %s3547_s29  ;;  %v2428_v53 = vadd.f32 %v2420_v49, %v382_v51  ;;  %v3402_v49 = vpack.c.bf16 %v2613_v12, %v2612_v48 }
0x26e9   :  { %v2431_v54 = vmul.f32 0.5, %v2429_v52  ;;  %v2615_v52 = vld [vmem:[%s4179_s5 + $0x18] sm:$0xff] }
0x26ea   :  { %v2430_v55 = vmul.f32 0.5, %v2428_v53 }
0x26eb   :  { %3524 = vtanh.f32 %v2431_v54  ;;  %v2618_v54 = vld [vmem:[%s4180_s6 + $0x10] sm:$0xff] }
0x26ec   :  { %3526 = vtanh.f32 %v2430_v55  ;;  %v2619_v55 = vld [vmem:[%s4180_s6 + $0x18] sm:$0xff] }
0x26f5   :  { %v3525_v56 = vpop.eup %3524 }
0x26f6   :  { %v3527_v57 = vpop.eup %3526  ;;  %v2435_v58 = vadd.f32 1.0, %v3525_v56 }
0x26f7   :  { %v2434_v59 = vadd.f32 1.0, %v3527_v57  ;;  %v3399_v57 = vpack.c.bf16 %v2619_v55, %v2618_v54 }
0x26f8   :  { %v2437_v60 = vmul.f32 0.5, %v2435_v58 }
0x26f9   :  { %v2436_v10 = vmul.f32 0.5, %v2434_v59 }
0x26fa   :  { %v2461_v4 = vsub.f32 1.0, %v2437_v60  ;;  %v2473_v26 = vmul.f32 %v2437_v60, %v2339_v44 }
0x26fb   :  { %v2460_v24 = vsub.f32 1.0, %v2436_v10  ;;  %v2472_v28 = vmul.f32 %v2436_v10, %v2338_v45 }
0x2759   :  { %v2443_v61 = vpop.permute.xlu1 %2442 }
0x275a   :  { %v2447_v11 = vmul.f32 %v2443_v61, %v2437_v60  ;;  %v2441_v62 = vpop.permute.xlu0 %2440 }
0x275b   :  { %v2446_v63 = vmul.f32 %v2441_v62, %v2436_v10 }
0x275c   :  { %2452 = vrot.lane.b32.xlu1 %v2447_v11, %s3547_s29 }
0x275d   :  { %2450 = vrot.lane.b32.xlu0 %v2446_v63, %s3547_s29 }
0x27ce   :  { %v2453_v17 = vpop.permute.xlu1 %2452 }
0x27cf   :  { %v2457_v18 = vadd.f32 %v2453_v17, %v387_v50  ;;  %v2451_v0 = vpop.permute.xlu0 %2450  ;;  %v2617_v50 = vld [vmem:[%s4180_s6 + $0x8] sm:$0xff] }
0x27d0   :  { %v2456_v1 = vadd.f32 %v2451_v0, %v382_v51  ;;  %v2614_v51 = vld [vmem:[%s4179_s5 + $0x10] sm:$0xff]  ;;  %v3396_v53 = vpack.c.bf16 %v2617_v50, %v2616_v13 }
0x27d1   :  { %3528 = vtanh.f32 %v2457_v18  ;;  %v3405_v56 = vpack.c.bf16 %v2615_v52, %v2614_v51 }
0x27d2   :  { %3530 = vtanh.f32 %v2456_v1  ;;  %3397 = vmatpush3.bf16.msra.mxu0 %v3396_v53 }
0x27d3   :  { %3398 = vmatprep.subr.bf16.mxu0 %v3549_v47 }
0x27d6   :  { %3400 = vmatpush3.bf16.msra.mxu0 %v3399_v57 }
0x27db   :  { %v3529_v2 = vpop.eup %3528 }
0x27dc   :  { %v3531_v21 = vpop.eup %3530  ;;  %2466 = vrot.lane.b32.xlu1 %v3529_v2, %s3548_s12 }
0x27dd   :  { %2464 = vrot.lane.b32.xlu0 %v3531_v21, %s3548_s12  ;;  %v15_v21 = vstv %s4181_s9 }
0x27de   :  { %16 = vst [vmem:[#allocation3] sm:$0x1] %v15_v21 }
0x284e   :  { %v2467_v23 = vpop.permute.xlu1 %2466 }
0x284f   :  { %v2471_v9 = vmul.f32 %v2467_v23, %v2461_v4  ;;  %v2465_v27 = vpop.permute.xlu0 %2464 }
0x2850   :  { %v2470_v8 = vmul.f32 %v2465_v27, %v2460_v24  ;;  %v2870_v24 = vld [vmem:[%s4182_s7] ss:$0 sm:$0xff] }
0x2851   :  { %v4108_v7 = vadd.f32 %v2473_v26, %v2471_v9 }
0x2852   :  { %v4110_v14 = vadd.f32 %v2472_v28, %v2470_v8  ;;  %v2871_v8 = vld [vmem:[%s4183_s8] ss:$0 sm:$0xff] }
0x2853   :  { %2483 = vrot.lane.b32.xlu1 %v4108_v7, %s3548_s12 }
0x2854   :  { %2481 = vrot.lane.b32.xlu0 %v4110_v14, %s3548_s12 }
0x28c5   :  { %v2484_v31 = vpop.permute.xlu1 %2483 }
0x28c6   :  { %v2482_v30 = vpop.permute.xlu0 %2481 }
0x28c7   :  { %3238 = vmatprep.mubr.msk.f32.mxu1 %vm445_vm1, %v2482_v30  ;;  %v2872_v30 = vld [vmem:[#allocation3] ss:$0 sm:$0xff] }
0x28c8   :  { %3239 = vmatmul.mubr.msk.f32.vlgmr.msra.gmra.mrb[22].mxu1 %vm445_vm1, %v2484_v31 }
0x28c9   :  { %3260 = vmatprep.mubr.msk.f32.mxu1 %vm3550_vm2, %v3546_v3  ;;  %3403 = vmatpush3.bf16.msra.mxu1 %v3402_v49 }
0x28ca   :  { %3404 = vmatprep.subr.bf16.mxu1 %v3549_v47 }
0x28cd   :  { %3406 = vmatpush3.bf16.msra.mxu1 %v3405_v56 }
0x299b   :  { %v3240_v32 = vpop.f32.mrb[22].mxu1 }
0x299c   :  { %v2561_v33 = vadd.f32 %v3975_v25, %v3240_v32  ;;  %v2555_v19 = vpop.f32.mrb[23].mxu1 }
0x299d   :  { %v2556_v15 = vadd.f32 %v3975_v25, %v2555_v19 }
0x299e   :  { %2578 = vrot.lane.b32.xlu1 %v2561_v33, %s3547_s29  ;;  %v2565_v35 = vadd.f32 %v2561_v33, %v397_v16 }
0x299f   :  { %2576 = vrot.lane.b32.xlu0 %v2556_v15, %s3547_s29  ;;  %v2564_v36 = vadd.f32 %v2556_v15, %v392_v34 }
0x29a0   :  { %v2567_v5 = vmul.f32 0.5, %v2565_v35 }
0x29a1   :  { %v2566_v6 = vmul.f32 0.5, %v2564_v36 }
0x29a2   :  { %3532 = vtanh.f32 %v2567_v5 }
0x29a3   :  { %3534 = vtanh.f32 %v2566_v6 }
0x29ac   :  { %v3533_v37 = vpop.eup %3532 }
0x29ad   :  { %v3535_v38 = vpop.eup %3534  ;;  %v2571_v39 = vadd.f32 1.0, %v3533_v37 }
0x29ae   :  { %v2570_v25 = vadd.f32 1.0, %v3535_v38 }
0x29af   :  { %v2573_v40 = vmul.f32 0.5, %v2571_v39 }
0x29b0   :  { %v2572_v42 = vmul.f32 0.5, %v2570_v25 }
0x29b1   :  { %v2597_v3 = vsub.f32 1.0, %v2573_v40  ;;  %v2609_v10 = vmul.f32 %v2573_v40, %v4108_v7 }
0x29b2   :  { %v2596_v61 = vsub.f32 1.0, %v2572_v42  ;;  %v2608_v63 = vmul.f32 %v2572_v42, %v4110_v14 }
0x2a10   :  { %v2579_v41 = vpop.permute.xlu1 %2578 }
0x2a11   :  { %v2583_v43 = vmul.f32 %v2579_v41, %v2573_v40  ;;  %v2577_v44 = vpop.permute.xlu0 %2576 }
0x2a12   :  { %v2582_v45 = vmul.f32 %v2577_v44, %v2572_v42 }
0x2a13   :  { %2588 = vrot.lane.b32.xlu1 %v2583_v43, %s3547_s29 }
0x2a14   :  { %2586 = vrot.lane.b32.xlu0 %v2582_v45, %s3547_s29 }
0x2a85   :  { %v2589_v20 = vpop.permute.xlu1 %2588 }
0x2a86   :  { %v2593_v22 = vadd.f32 %v2589_v20, %v397_v16  ;;  %v2587_v29 = vpop.permute.xlu0 %2586 }
0x2a87   :  { %v2592_v46 = vadd.f32 %v2587_v29, %v392_v34 }
0x2a88   :  { %3536 = vtanh.f32 %v2593_v22 }
0x2a89   :  { %3538 = vtanh.f32 %v2592_v46 }
0x2a92   :  { %v3537_v58 = vpop.eup %3536 }
0x2a93   :  { %v3539_v59 = vpop.eup %3538  ;;  %2602 = vrot.lane.b32.xlu1 %v3537_v58, %s3548_s12 }
0x2a94   :  { %2600 = vrot.lane.b32.xlu0 %v3539_v59, %s3548_s12 }
0x2b05   :  { %v2603_v60 = vpop.permute.xlu1 %2602 }
0x2b06   :  { %v2607_v11 = vmul.f32 %v2603_v60, %v2597_v3  ;;  %v2601_v62 = vpop.permute.xlu0 %2600 }
0x2b07   :  { %v2606_v17 = vmul.f32 %v2601_v62, %v2596_v61 }
0x2b08   :  { %v2611_v18 = vadd.f32 %v2609_v10, %v2607_v11 }
0x2b09   :  { %v2610_v0 = vadd.f32 %v2608_v63, %v2606_v17 }
0x2b0a   :  { %2696 = vrot.lane.b32.xlu1 %v2611_v18, %s3548_s12 }
0x2b0b   :  { %2621 = vrot.lane.b32.xlu0 %v2610_v0, %s3548_s12 }
0x2b7c   :  { %v2697_v1 = vpop.permute.xlu1 %2696 }
0x2b7d   :  { %3261 = vmatmul.mubr.msk.f32.vlgmr.msra.gmra.mrb[24].mxu1 %vm445_vm1, %v2697_v1  ;;  %v2622_v2 = vpop.permute.xlu0 %2621 }
0x2b7e   :  { %3250 = vmatmul.mubr.msk.f32.vlgmr.msra.gmra.mrb[40].mxu0 %vm445_vm1, %v2622_v2 }
0x2c50   :  { %v2766_v4 = vpop.f32.mrb[24].mxu1 }
0x2c51   :  { %v2691_v23 = vpop.f32.mrb[40].mxu0  ;;  %v3262_v26 = vpop.f32.mrb[25].mxu1 }
0x2c52   :  { %v2767_v9 = vadd.f32 %v2766_v4, %v2691_v23  ;;  %v3251_v27 = vpop.f32.mrb[41].mxu0 }
0x2c54   :  { %v2777_v28 = vadd.f32 %v2870_v24, %v2767_v9 }
0x2c56   :  { %3540 = vtanh.f32 %v2777_v28 }
0x2c60   :  { %v3541_v7 = vpop.eup %3540 }
0x2c61   :  { %v2786_v14 = vmul.f32 %v3541_v7, %v2871_v8 }
0x2c63   :  { %2787 = vadd.xlane.f32.xlu0 %v2786_v14 }
0x2cf0   :  { %v2788_v31 = vpop.xlane.xlu0 %2787 }
0x2cf1   :  { %v2796_v32 = vadd.f32 %v2872_v30, %v2788_v31 }
0x2cf3   :  { %3542 = vtanh.f32 %v2796_v32 }
0x2cfd   :  { %v3543_v33 = vpop.eup %3542 }
0x2cfe   :  { %2799 = vst.msk [vmem:[%s4184_s10] sm:$0xff] %vm2798_vm3, %v3543_v33 }

</bundles_post_ra>
